<compile_context>
chip_gen: v5e
topology: v5e:2x2
jax: 0.10.0
libtpu: 0.0.40
codegen_flags: <defaults>
</compile_context>

<pallas_src>
import functools

import jax
import jax.numpy as jnp
from jax import lax
from jax.experimental import pallas as pl
from jax.experimental.pallas import tpu as pltpu


# ---------------------------------------------------------------------------
# Small helpers.
# ---------------------------------------------------------------------------
def _mm(a, b):
    """a @ b on the MXU, f32 accumulation.  Operands are pre-cast host-side."""
    return jnp.dot(a, b, preferred_element_type=jnp.float32)


def _mm_bt(a, b):
    """a[m,k] @ b[n,k]^T -> [m,n] without materializing a transpose (XLU-free)."""
    return lax.dot_general(a, b,
                           dimension_numbers=(((1,), (1,)), ((), ())),
                           preferred_element_type=jnp.float32)


def _round_up(x, m):
    return ((x + m - 1) // m) * m


def _choose_tile(n, *, max_tile, align, min_steps=2):
    """Aligned tile <= max_tile with (when possible) >= min_steps grid steps so
    v7x's two TensorCores both get work.  The caller pads n up to a multiple of
    the returned tile (no silent full-dimension fallback)."""
    n_al = _round_up(n, align)
    tile = _round_up(min(max_tile, n_al), align)
    if pl.cdiv(n_al, tile) < min_steps and tile > align:
        tile = max(align, _round_up(pl.cdiv(n_al, min_steps), align))
    return tile


def _pad_axis0(x, n_pad):
    n = x.shape[0]
    if n == n_pad:
        return x
    return jnp.pad(x, ((0, n_pad - n),) + ((0, 0),) * (x.ndim - 1))


def _gate_apply(x_mm, z, act_dtype):
    """Finish Gate.forward given the stacked pre-activation
         z = [x_ent | x_lit] @ [[gw_ent | g1w], [gw_lit | g2w]] + [gb | gate_bias]
       (f32, width 2d):
         g_emb = tanh(z[:, :d]);  gate = sigmoid(z[:, d:])
         out   = (1 - gate) * x_ent + gate * g_emb = x_ent + gate*(g_emb - x_ent)
       Elementwise stays f32 by default (v5e has no bf16 VPU/EUP); pass
       act_dtype=jnp.bfloat16 on v6e/v7x to run tanh/sigmoid on the bf16 EUP."""
    d = x_mm.shape[-1]
    if act_dtype != jnp.float32:
        z = z.astype(act_dtype)
    g_emb = jnp.tanh(z[:, :d]).astype(jnp.float32)
    gate = jax.nn.sigmoid(z[:, d:]).astype(jnp.float32)
    x = x_mm.astype(jnp.float32)
    return x + gate * (g_emb - x)


# ---------------------------------------------------------------------------
# Parameter construction / packing.
# ---------------------------------------------------------------------------
def xavier_normal(key, shape):
    fan_in, fan_out = shape[0], shape[1]
    std = jnp.sqrt(2.0 / (fan_in + fan_out))
    return jax.random.normal(key, shape, dtype=jnp.float32) * std


def make_gate_params(key, emb_dim, num_att):
    """Gate(input_size=emb_dim+num_att, output_size=emb_dim).  Weights stored
    as [in, out] (pre-transposed relative to nn.Linear)."""
    k1, k2, k3, k4 = jax.random.split(key, 4)
    gw_full = xavier_normal(k1, (emb_dim + num_att, emb_dim))   # g.weight.T
    gw_ent = gw_full[:emb_dim]
    gw_lit = gw_full[emb_dim:]
    gb = jax.random.normal(k2, (1, emb_dim), dtype=jnp.float32) * 0.01  # g.bias
    g1w = xavier_normal(k3, (emb_dim, emb_dim))                 # g1.weight.T
    g2w = xavier_normal(k4, (num_att, emb_dim))                 # g2.weight.T
    gbias = jnp.zeros((1, emb_dim), dtype=jnp.float32)          # gate_bias
    return (gw_ent, gw_lit, gb, g1w, g2w, gbias)


def pack_gate_params(gate_params, mm_dtype):
    """Stack the gate weights so each gate needs 2 matmuls instead of 4:
         x_ent @ [gw_ent | g1w]   -> [., 2d]
         x_lit @ [gw_lit | g2w]   -> [., 2d]
       Cast ONCE here to the MXU dtype (no per-grid-step casts)."""
    gw_ent, gw_lit, gb, g1w, g2w, gbias = gate_params
    w_ent = jnp.concatenate([gw_ent, g1w], axis=1).astype(mm_dtype)   # [d, 2d]
    w_lit = jnp.concatenate([gw_lit, g2w], axis=1).astype(mm_dtype)   # [a, 2d]
    bias = jnp.concatenate([gb, gbias], axis=1).astype(jnp.float32)   # [1, 2d]
    return w_ent, w_lit, bias


def prepare_params(params, *, mm_dtype=jnp.bfloat16):
    """Cast tables / pack & cast weights once, host-side (stored in HBM in the
    MXU dtype; halves the dominant HBM stream when mm_dtype=bf16)."""
    (emb_e_real, emb_e_img, emb_rel_real, emb_rel_img,
     num_lit_bin, gate_real_params, gate_img_params, ent_bias) = params
    w_ent_r, w_lit_r, b_r = pack_gate_params(gate_real_params, mm_dtype)
    w_ent_i, w_lit_i, b_i = pack_gate_params(gate_img_params, mm_dtype)
    # The same literal rows feed both gates -> stack all four literal weights
    # so ONE [rows, a] @ [a, 4d] matmul covers gw_lit/g2 of both gates.
    w_lit_all = jnp.concatenate([w_lit_r, w_lit_i], axis=1)           # [a, 4d]
    return dict(
        emb_e_real=emb_e_real.astype(mm_dtype),
        emb_e_img=emb_e_img.astype(mm_dtype),
        emb_rel_real=emb_rel_real.astype(jnp.float32),   # elementwise only
        emb_rel_img=emb_rel_img.astype(jnp.float32),
        num_lit_bin=num_lit_bin.astype(mm_dtype),
        w_ent_r=w_ent_r, w_ent_i=w_ent_i, w_lit_all=w_lit_all,
        b_r=b_r, b_i=b_i,
        ent_bias=ent_bias.astype(jnp.float32),
    )


# ---------------------------------------------------------------------------
# Kernel 1: standalone Gate module (the spec'd nn.Module), tiled over rows.
# 2 MXU matmuls per tile (stacked weights) instead of 4.
# ---------------------------------------------------------------------------
def gate_kernel(x_ent_ref, x_lit_ref, w_ent_ref, w_lit_ref, b_ref, out_ref, *,
                act_dtype):
    x = x_ent_ref[...]
    z = _mm(x, w_ent_ref[...]) + _mm(x_lit_ref[...], w_lit_ref[...]) + b_ref[...]
    out_ref[...] = _gate_apply(x, z, act_dtype).astype(out_ref.dtype)


def gate_forward(x_ent, x_lit, gate_params, *, tile_rows=None,
                 mm_dtype=jnp.bfloat16, act_dtype=jnp.float32):
    n, d = x_ent.shape
    a = x_lit.shape[1]
    w_ent, w_lit, bias = pack_gate_params(gate_params, mm_dtype)
    if tile_rows is None:
        tile_rows = _choose_tile(n, max_tile=1024, align=8, min_steps=2)
    n_pad = _round_up(n, tile_rows)
    x_ent_p = _pad_axis0(x_ent.astype(mm_dtype), n_pad)
    x_lit_p = _pad_axis0(x_lit.astype(mm_dtype), n_pad)
    grid = (n_pad // tile_rows,)

    row = lambda shape: pl.BlockSpec(shape, lambda i: (i, 0))
    inv = lambda shape: pl.BlockSpec(shape, lambda i: (0, 0))   # grid-invariant
    out = pl.pallas_call(
        functools.partial(gate_kernel, act_dtype=act_dtype),
        out_shape=jax.ShapeDtypeStruct((n_pad, d), jnp.float32),
        grid_spec=pl.GridSpec(
            grid=grid,
            in_specs=[row((tile_rows, d)),       # x_ent rows
                      row((tile_rows, a)),       # x_lit rows
                      inv((d, 2 * d)),           # [gw_ent | g1w]
                      inv((a, 2 * d)),           # [gw_lit | g2w]
                      inv((1, 2 * d))],          # [gb | gate_bias]
            out_specs=pl.BlockSpec((tile_rows, d), lambda i: (i, 0)),
        ),
        compiler_params=pltpu.CompilerParams(
            dimension_semantics=("parallel",)),
    )(x_ent_p, x_lit_p, w_ent, w_lit, bias)
    return out[:n] if n_pad != n else out


# ---------------------------------------------------------------------------
# Kernel 2: e1-side — both gates (real & img) + ComplEx LHS factoring fused
# into a single small pallas_call (batch is tiny; one grid step).
#   lhs_r = gate_r(x_real) * rr - gate_i(x_img) * ri
#   lhs_i = gate_r(x_real) * ri + gate_i(x_img) * rr
# Outputs are emitted directly in mm_dtype for the scoring matmuls.
# ---------------------------------------------------------------------------
def e1_lhs_kernel(xr_ref, xi_ref, lit_ref, rr_ref, ri_ref,
                  w_ent_r_ref, w_ent_i_ref, w_lit_ref, b_r_ref, b_i_ref,
                  lhs_r_ref, lhs_i_ref, *, act_dtype):
    xr = xr_ref[...]
    xi = xi_ref[...]
    d = xr.shape[-1]
    lit_all = _mm(lit_ref[...], w_lit_ref[...])                 # [b, 4d], 1 pass
    z_r = _mm(xr, w_ent_r_ref[...]) + lit_all[:, :2 * d] + b_r_ref[...]
    z_i = _mm(xi, w_ent_i_ref[...]) + lit_all[:, 2 * d:] + b_i_ref[...]
    e1r = _gate_apply(xr, z_r, act_dtype)
    e1i = _gate_apply(xi, z_i, act_dtype)
    rr = rr_ref[...]
    ri = ri_ref[...]
    lhs_r_ref[...] = (e1r * rr - e1i * ri).astype(lhs_r_ref.dtype)
    lhs_i_ref[...] = (e1r * ri + e1i * rr).astype(lhs_i_ref.dtype)


def e1_lhs_forward(x_real, x_img, x_lit, rel_real, rel_img,
                   w_ent_r, w_ent_i, w_lit_all, b_r, b_i, *,
                   mm_dtype=jnp.bfloat16, act_dtype=jnp.float32):
    b, d = x_real.shape
    a = x_lit.shape[1]
    full = lambda shape: pl.BlockSpec(shape, lambda i: (0, 0))
    return pl.pallas_call(
        functools.partial(e1_lhs_kernel, act_dtype=act_dtype),
        out_shape=(jax.ShapeDtypeStruct((b, d), mm_dtype),
                   jax.ShapeDtypeStruct((b, d), mm_dtype)),
        grid_spec=pl.GridSpec(
            grid=(1,),
            in_specs=[full((b, d)), full((b, d)), full((b, a)),
                      full((b, d)), full((b, d)),
                      full((d, 2 * d)), full((d, 2 * d)), full((a, 4 * d)),
                      full((1, 2 * d)), full((1, 2 * d))],
            out_specs=[full((b, d)), full((b, d))],
        ),
    )(x_real.astype(mm_dtype), x_img.astype(mm_dtype), x_lit.astype(mm_dtype),
      rel_real.astype(jnp.float32), rel_img.astype(jnp.float32),
      w_ent_r, w_ent_i, w_lit_all, b_r, b_i)


# ---------------------------------------------------------------------------
# Kernel 3: fused e2-gate + ComplEx scoring against all entities, tiled over
# the entity (output-column) axis.  Per tile (3 gate matmuls + 2 score matmuls):
#   lit_all = lit @ [Wlit_r | Wlit_i]                      (a  -> 4d)
#   z_r     = er @ [Wg_ent_r | Wg1_r] + lit_all[:, :2d] + bias_r
#   z_i     = ei @ [Wg_ent_i | Wg1_i] + lit_all[:, 2d:] + bias_i
#   e2r, e2i = gated entities;  pred = sigmoid(lhs_r @ e2r^T + lhs_i @ e2i^T + b)
# ---------------------------------------------------------------------------
def fused_score_kernel(lhs_r_ref, lhs_i_ref, er_ref, ei_ref, lit_ref,
                       w_ent_r_ref, w_ent_i_ref, w_lit_ref, b_r_ref, b_i_ref,
                       bias_ref, out_ref, *, act_dtype, mm_dtype):
    er = er_ref[...]
    ei = ei_ref[...]
    d = er.shape[-1]
    lit_all = _mm(lit_ref[...], w_lit_ref[...])                 # [tile_e, 4d]
    z_r = _mm(er, w_ent_r_ref[...]) + lit_all[:, :2 * d] + b_r_ref[...]
    z_i = _mm(ei, w_ent_i_ref[...]) + lit_all[:, 2 * d:] + b_i_ref[...]
    e2r = _gate_apply(er, z_r, act_dtype).astype(mm_dtype)
    e2i = _gate_apply(ei, z_i, act_dtype).astype(mm_dtype)
    pred = (_mm_bt(lhs_r_ref[...], e2r)
            + _mm_bt(lhs_i_ref[...], e2i)
            + bias_ref[...])
    out_ref[...] = jax.nn.sigmoid(pred).astype(out_ref.dtype)


def fused_score_forward(lhs_r, lhs_i, emb_e_real, emb_e_img, num_lit_bin,
                        w_ent_r, w_ent_i, w_lit_all, b_r, b_i, bias_row, *,
                        tile_e=None, mm_dtype=jnp.bfloat16,
                        act_dtype=jnp.float32,
                        vmem_limit_bytes=48 * 1024 * 1024):
    b, d = lhs_r.shape
    e = emb_e_real.shape[0]
    a = num_lit_bin.shape[1]
    if tile_e is None:
        # Big lane-dense tile to amortize the ~0.35 us/step overhead and fill
        # the 256-wide v6e/v7x MXU on the gate matmuls; the entity axis is
        # padded to a multiple of the tile (works for non-128-multiple entity
        # counts), with >= 2 grid steps kept for v7x's two TensorCores.
        tile_e = _choose_tile(e, max_tile=2048, align=128, min_steps=2)
    e_pad = _round_up(e, tile_e)
    er_p = _pad_axis0(emb_e_real.astype(mm_dtype), e_pad)
    ei_p = _pad_axis0(emb_e_img.astype(mm_dtype), e_pad)
    lit_p = _pad_axis0(num_lit_bin.astype(mm_dtype), e_pad)
    bias_p = bias_row if e_pad == e else jnp.pad(bias_row,
                                                 ((0, 0), (0, e_pad - e)))
    grid = (e_pad // tile_e,)

    inv = lambda shape: pl.BlockSpec(shape, lambda j: (0, 0))   # grid-invariant
    ent = lambda shape: pl.BlockSpec(shape, lambda j: (j, 0))   # entity tiles
    # NOTE: the grid-invariant weights total ~0.15 MiB after stacking + bf16,
    # so default double-buffering them costs negligible VMEM (pl.Buffered(1)
    # intentionally not used).
    return pl.pallas_call(
        functools.partial(fused_score_kernel, act_dtype=act_dtype,
                          mm_dtype=mm_dtype),
        out_shape=jax.ShapeDtypeStruct((b, e_pad), jnp.float32),
        grid_spec=pl.GridSpec(
            grid=grid,
            in_specs=[inv((b, d)), inv((b, d)),                  # lhs_r, lhs_i
                      ent((tile_e, d)), ent((tile_e, d)),        # emb_e tiles
                      ent((tile_e, a)),                          # literal tile
                      inv((d, 2 * d)), inv((d, 2 * d)),          # stacked Went
                      inv((a, 4 * d)),                           # stacked Wlit
                      inv((1, 2 * d)), inv((1, 2 * d)),          # stacked biases
                      pl.BlockSpec((1, tile_e), lambda j: (0, j))],  # ent bias
            out_specs=pl.BlockSpec((b, tile_e), lambda j: (0, j)),
        ),
        compiler_params=pltpu.CompilerParams(
            dimension_semantics=("parallel",),
            # Explicit scoped-VMEM budget: above the 16/32 MiB generation
            # defaults (room for tile_e=2048), below v7x's 64 MiB physical.
            vmem_limit_bytes=vmem_limit_bytes),
    )(lhs_r, lhs_i, er_p, ei_p, lit_p,
      w_ent_r, w_ent_i, w_lit_all, b_r, b_i, bias_p)[:, :e]


# ---------------------------------------------------------------------------
# Full forward pass of ComplExLiteral_gate (the Gate module's host model).
# ---------------------------------------------------------------------------
def complex_literal_gate_forward(prep, e1, rel, *, act_dtype=jnp.float32,
                                 tile_e=None):
    mm_dtype = prep["emb_e_real"].dtype
    num_ents = prep["emb_e_real"].shape[0]
    # Faithfully reproduces the reference bug: emb_rel_img is indexed by e1.
    # That silently requires every entity id to be a valid relation row:
    assert prep["emb_rel_img"].shape[0] >= num_ents, \
        "emb_rel_img indexed by e1 requires 2*num_rels >= num_ents"

    # Gathers (torch.index_select) — plain-JAX glue (negligible at small batch).
    e1_emb_real = jnp.take(prep["emb_e_real"], e1, axis=0)
    e1_emb_img = jnp.take(prep["emb_e_img"], e1, axis=0)
    rel_emb_real = jnp.take(prep["emb_rel_real"], rel, axis=0)
    rel_emb_img = jnp.take(prep["emb_rel_img"], e1, axis=0)     # reference bug
    e1_num_lit = jnp.take(prep["num_lit_bin"], e1, axis=0)

    # inp_drop: eval-mode dropout == identity.
    # TODO(synk): training-mode dropout (pltpu.prng_random_bits) not implemented.

    # e1 side: both gates + the 4->2 ComplEx factoring, one kernel launch.
    lhs_r, lhs_i = e1_lhs_forward(
        e1_emb_real, e1_emb_img, e1_num_lit, rel_emb_real, rel_emb_img,
        prep["w_ent_r"], prep["w_ent_i"], prep["w_lit_all"],
        prep["b_r"], prep["b_i"], mm_dtype=mm_dtype, act_dtype=act_dtype)

    # e2 side: gate fused into the score kernel (single HBM pass over tables).
    bias_row = prep["ent_bias"].reshape(1, num_ents)
    pred = fused_score_forward(
        lhs_r, lhs_i, prep["emb_e_real"], prep["emb_e_img"],
        prep["num_lit_bin"], prep["w_ent_r"], prep["w_ent_i"],
        prep["w_lit_all"], prep["b_r"], prep["b_i"], bias_row,
        tile_e=tile_e, mm_dtype=mm_dtype, act_dtype=act_dtype)
    return pred, 0


# ---------------------------------------------------------------------------
# Pure-JAX references (for correctness checking).
# ---------------------------------------------------------------------------
def gate_ref(x_ent, x_lit, p):
    gw_ent, gw_lit, gb, g1w, g2w, gbias = p
    g_emb = jnp.tanh(x_ent @ gw_ent + x_lit @ gw_lit + gb)
    gate = jax.nn.sigmoid(x_ent @ g1w + x_lit @ g2w + gbias)
    return (1.0 - gate) * x_ent + gate * g_emb


def forward_ref(params, e1, rel):
    (emb_e_real, emb_e_img, emb_rel_real, emb_rel_img,
     num_lit_bin, gp_r, gp_i, ent_bias) = params
    e1r = gate_ref(jnp.take(emb_e_real, e1, 0), jnp.take(num_lit_bin, e1, 0), gp_r)
    e1i = gate_ref(jnp.take(emb_e_img, e1, 0), jnp.take(num_lit_bin, e1, 0), gp_i)
    e2r = gate_ref(emb_e_real, num_lit_bin, gp_r)
    e2i = gate_ref(emb_e_img, num_lit_bin, gp_i)
    rr = jnp.take(emb_rel_real, rel, 0)
    ri = jnp.take(emb_rel_img, e1, 0)   # same indexing bug as the module
    pred = ((e1r * rr) @ e2r.T + (e1r * ri) @ e2i.T
            + (e1i * rr) @ e2i.T - (e1i * ri) @ e2r.T)
    pred = pred + ent_bias[None, :]
    return jax.nn.sigmoid(pred)


# ---------------------------------------------------------------------------
if __name__ == "__main__":
    key = jax.random.PRNGKey(0)
    (k_er, k_ei, k_rr, k_ri, k_lit, k_gr, k_gi, k_e1, k_rel) = \
        jax.random.split(key, 9)

    # Small shapes consistent with the module.
    num_ents = 256
    num_rels = 128          # 2*num_rels == num_ents (module indexes emb_rel_img
                            # with e1, so this must hold to run)
    emb_dim = 128           # p.init_dim
    num_att = 16            # numerical_literals.shape[1]
    batch = 8

    emb_e_real = xavier_normal(k_er, (num_ents, emb_dim))
    emb_e_img = xavier_normal(k_ei, (num_ents, emb_dim))
    emb_rel_real = xavier_normal(k_rr, (num_rels * 2, emb_dim))
    emb_rel_img = xavier_normal(k_ri, (num_rels * 2, emb_dim))

    numerical_literals = jax.random.uniform(
        k_lit, (num_ents, num_att), minval=-1.0, maxval=1.0, dtype=jnp.float32)
    num_lit_bin = jnp.where(numerical_literals > 0, 1.0, 0.0).astype(jnp.float32)

    gate_real_params = make_gate_params(k_gr, emb_dim, num_att)
    gate_img_params = make_gate_params(k_gi, emb_dim, num_att)
    ent_bias = jnp.zeros((num_ents,), dtype=jnp.float32)

    params = (emb_e_real, emb_e_img, emb_rel_real, emb_rel_img,
              num_lit_bin, gate_real_params, gate_img_params, ent_bias)

    e1 = jax.random.randint(k_e1, (batch,), 0, num_ents, dtype=jnp.int32)
    rel = jax.random.randint(k_rel, (batch,), 0, num_rels * 2, dtype=jnp.int32)

    # ---- 1) Standalone Gate kernel (the spec'd nn.Module) ----
    g_ref = gate_ref(emb_e_real, num_lit_bin, gate_real_params)

    # f32 MXU path: tight correctness check.
    g_f32 = jax.block_until_ready(
        gate_forward(emb_e_real, num_lit_bin, gate_real_params,
                     mm_dtype=jnp.float32))
    assert g_f32.shape == (num_ents, emb_dim)
    assert jnp.allclose(g_f32, g_ref, atol=5e-5, rtol=5e-5), \
        float(jnp.max(jnp.abs(g_f32 - g_ref)))

    # bf16 MXU path (the fast default): dtype-appropriate tolerance.
    g_bf16 = jax.block_until_ready(
        gate_forward(emb_e_real, num_lit_bin, gate_real_params))
    assert jnp.allclose(g_bf16, g_ref, atol=2e-2, rtol=2e-2), \
        float(jnp.max(jnp.abs(g_bf16 - g_ref)))

    # ---- 2) Full fused forward pass vs. reference ----
    ref = forward_ref(params, e1, rel)

    # f32 path (tight).
    prep_f32 = prepare_params(params, mm_dtype=jnp.float32)
    pred_f32, _ = jax.jit(complex_literal_gate_forward)(prep_f32, e1, rel)
    pred_f32 = jax.block_until_ready(pred_f32)
    assert pred_f32.shape == (batch, num_ents)
    assert jnp.allclose(pred_f32, ref, atol=2e-4, rtol=2e-4), \
        float(jnp.max(jnp.abs(pred_f32 - ref)))

    # bf16 MXU path (the fast default; loosened tolerance).
    prep_bf16 = prepare_params(params, mm_dtype=jnp.bfloat16)
    pred_bf16, _ = jax.jit(complex_literal_gate_forward)(prep_bf16, e1, rel)
    pred_bf16 = jax.block_until_ready(pred_bf16)
    assert pred_bf16.shape == (batch, num_ents)
    assert jnp.allclose(pred_bf16, ref, atol=2e-2, rtol=2e-2), \
        float(jnp.max(jnp.abs(pred_bf16 - ref)))

    print("KERNEL_OK")
</pallas_src>

<mosaic_0001>
module attributes {stable_mosaic.version = 11 : i64} {
  func.func @gate_kernel(%arg0: i32, %arg1: memref<128x128xf32, #tpu.memory_space<vmem>>, %arg2: memref<128x16xf32, #tpu.memory_space<vmem>>, %arg3: memref<128x256xf32, #tpu.memory_space<vmem>>, %arg4: memref<16x256xf32, #tpu.memory_space<vmem>>, %arg5: memref<1x256xf32, #tpu.memory_space<vmem>>, %arg6: memref<128x128xf32, #tpu.memory_space<vmem>>) attributes {dimension_semantics = [#tpu.dimension_semantics<parallel>], iteration_bounds = array<i64: 2>, scalar_prefetch = 0 : i64, scratch_operands = 0 : i64, tpu.core_type = #tpu.core_type<tc>, window_params = [{transform_indices = @transform_0, window_bounds = array<i64: 128, 128>}, {transform_indices = @transform_1, window_bounds = array<i64: 128, 16>}, {pipeline_mode = #tpu.pipeline_mode<synchronous>, transform_indices = @transform_2, window_bounds = array<i64: 128, 256>}, {pipeline_mode = #tpu.pipeline_mode<synchronous>, transform_indices = @transform_3, window_bounds = array<i64: 16, 256>}, {pipeline_mode = #tpu.pipeline_mode<synchronous>, transform_indices = @transform_4, window_bounds = array<i64: 1, 256>}, {transform_indices = @transform_5, window_bounds = array<i64: 128, 128>}]} {
    %c0 = arith.constant 0 : index
    %c0_0 = arith.constant 0 : index
    %0 = vector.load %arg1[%c0, %c0_0] : memref<128x128xf32, #tpu.memory_space<vmem>>, vector<128x128xf32>
    %c0_1 = arith.constant 0 : index
    %c0_2 = arith.constant 0 : index
    %1 = vector.load %arg3[%c0_1, %c0_2] : memref<128x256xf32, #tpu.memory_space<vmem>>, vector<128x256xf32>
    %cst = arith.constant dense<0.000000e+00> : vector<128x256xf32>
    %2 = tpu.matmul %0, %1, %cst {dimension_numbers = #tpu.dot_dimension_numbers<[1], [0], [0], [1], [0, 0, 1, 1], [], []>} : vector<128x128xf32>, vector<128x256xf32>, vector<128x256xf32> -> vector<128x256xf32>
    %c0_3 = arith.constant 0 : index
    %c0_4 = arith.constant 0 : index
    %3 = vector.load %arg2[%c0_3, %c0_4] : memref<128x16xf32, #tpu.memory_space<vmem>>, vector<128x16xf32>
    %c0_5 = arith.constant 0 : index
    %c0_6 = arith.constant 0 : index
    %4 = vector.load %arg4[%c0_5, %c0_6] : memref<16x256xf32, #tpu.memory_space<vmem>>, vector<16x256xf32>
    %cst_7 = arith.constant dense<0.000000e+00> : vector<128x256xf32>
    %5 = tpu.matmul %3, %4, %cst_7 {dimension_numbers = #tpu.dot_dimension_numbers<[1], [0], [0], [1], [0, 0, 1, 1], [], []>} : vector<128x16xf32>, vector<16x256xf32>, vector<128x256xf32> -> vector<128x256xf32>
    %6 = arith.addf %2, %5 : vector<128x256xf32>
    %c0_8 = arith.constant 0 : index
    %c0_9 = arith.constant 0 : index
    %7 = vector.load %arg5[%c0_8, %c0_9] : memref<1x256xf32, #tpu.memory_space<vmem>>, vector<1x256xf32>
    %8 = vector.broadcast %7 : vector<1x256xf32> to vector<128x256xf32>
    %9 = arith.addf %6, %8 : vector<128x256xf32>
    %10 = vector.extract_strided_slice %9 {offsets = [0, 0], sizes = [128, 128], strides = [1, 1]} : vector<128x256xf32> to vector<128x128xf32>
    %11 = math.tanh %10 : vector<128x128xf32>
    %12 = vector.extract_strided_slice %9 {offsets = [0, 128], sizes = [128, 128], strides = [1, 1]} : vector<128x256xf32> to vector<128x128xf32>
    %13 = arith.negf %12 : vector<128x128xf32>
    %14 = math.exp %13 : vector<128x128xf32>
    %cst_10 = arith.constant 1.000000e+00 : f32
    %15 = vector.broadcast %cst_10 : f32 to vector<128x128xf32>
    %16 = arith.addf %15, %14 : vector<128x128xf32>
    %17 = arith.divf %15, %16 : vector<128x128xf32>
    %18 = arith.subf %11, %0 : vector<128x128xf32>
    %19 = arith.mulf %17, %18 : vector<128x128xf32>
    %20 = arith.addf %0, %19 : vector<128x128xf32>
    %c0_11 = arith.constant 0 : index
    %c0_12 = arith.constant 0 : index
    %21 = vector.load %arg6[%c0_11, %c0_12] : memref<128x128xf32, #tpu.memory_space<vmem>>, vector<128x128xf32>
    tpu.vector_store %arg6[%c0_11, %c0_12], %20 {strides = array<i32>} : memref<128x128xf32, #tpu.memory_space<vmem>>, vector<128x128xf32>,
    return
  }
  func.func @transform_0(%arg0: i32) -> (i32, i32) {
    %c0_i32 = arith.constant 0 : i32
    %c0_i32_0 = arith.constant 0 : i32
    return %arg0, %c0_i32 : i32, i32
  }
  func.func @transform_1(%arg0: i32) -> (i32, i32) {
    %c0_i32 = arith.constant 0 : i32
    %c0_i32_0 = arith.constant 0 : i32
    return %arg0, %c0_i32 : i32, i32
  }
  func.func @transform_2(%arg0: i32) -> (i32, i32) {
    %c0_i32 = arith.constant 0 : i32
    %c0_i32_0 = arith.constant 0 : i32
    %c0_i32_1 = arith.constant 0 : i32
    return %c0_i32, %c0_i32_0 : i32, i32
  }
  func.func @transform_3(%arg0: i32) -> (i32, i32) {
    %c0_i32 = arith.constant 0 : i32
    %c0_i32_0 = arith.constant 0 : i32
    %c0_i32_1 = arith.constant 0 : i32
    return %c0_i32, %c0_i32_0 : i32, i32
  }
  func.func @transform_4(%arg0: i32) -> (i32, i32) {
    %c0_i32 = arith.constant 0 : i32
    %c0_i32_0 = arith.constant 0 : i32
    %c0_i32_1 = arith.constant 0 : i32
    return %c0_i32, %c0_i32_0 : i32, i32
  }
  func.func @transform_5(%arg0: i32) -> (i32, i32) {
    %c0_i32 = arith.constant 0 : i32
    %c0_i32_0 = arith.constant 0 : i32
    return %arg0, %c0_i32 : i32, i32
  }
}

</mosaic_0001>

<bundles_post_ra>
// kernel: tpu_custom_call.1
= control target key start
LH: loop header
LB: loop body
LE: loop exit
PB: predicated region body
PF: predicated region fallthrough
CT: control target
= control target key end

     0   :  { %10 = vsyncpa [#allocation3], 0  ;;  %s2049_s0 = inlined_call_operand.vmem [shape: f32[256,128], index: 0, kind: input, shape index: {}]   ;;  %s2050_s1 = inlined_call_operand.vmem [shape: f32[256,16], index: 1, kind: input, shape index: {}]   ;;  %s2051_s2 = inlined_call_operand.hbm [shape: f32[128,256], index: 2, kind: input, shape index: {}]   ;;  %s2052_s3 = inlined_call_operand.vmem [shape: f32[16,256], index: 3, kind: input, shape index: {}]   ;;  %s2053_s4 = inlined_call_operand.vmem [shape: f32[1,256], index: 4, kind: input, shape index: {}]   ;;  %s2054_s5 = inlined_call_operand.hbm [shape: f32[256,128], index: 5, kind: output, shape index: {}]  }
   0x1   :  { %11 = vsyncpa [#allocation4], 0 }
   0x2   :  { %13 = vsyncpa [#allocation4 + $0x1], 0  ;;  %s1548_s18 = smov 0   ;;  %s1550_s19 = smov 0  }
   0x3   :  { %s1552_s20 = smov 0   ;;  %s1554_s21 = smov 0  }
   0x4 LB: > { %s1569_s22 = sadd.s32 4294967295, %s1511_s21   ;;  %s1166_s23 = sadd.s32 4294967294, %s1511_s21   ;;  %s1511_s21 = sphi %s1554_s21, %s2060_s21   ;;  %s1507_s20 = sphi %s1552_s20, %s2059_s20   ;;  %s1503_s19 = sphi %s1550_s19, %s2058_s19   ;;  %s1499_s18 = sphi %s1548_s18, %s2057_s18  }
   0x5   : > { %s1573_s24 = sadd.s32 1, %s1511_s21   ;;  %s141_s25 = sadd.s32 1, %s1507_s20 }
   0x6   : > { %s138_s26 = ssub.s32 %s1511_s21, %s1573_s24  ;;  %p151_p0 = scmp.ne.s32.totalorder %s1507_s20, %s1503_s19 }
   0x7   : > { %p139_p1 = scmp.eq.s32.totalorder %s138_s26, 0  ;;  %p152_p2 = scmp.eq.s32.totalorder %s1569_s22, 1 }
   0x8   : > { %p157_p3 = scmp.ne.s32.totalorder %s1503_s19, %s1499_s18  ;;  %p158_p4 = scmp.eq.s32.totalorder %s1166_s23, 1 }
   0x9   : > { %s1584_s27 = scalar_select %p139_p1, %s1507_s20, %s141_s25  }
   0xa   : > { %p1586_p5 = por %p152_p2, %p151_p0  ;;  %p1590_p6 = por %p158_p4, %p157_p3 }
   0xb   : > { %p1167_p7 = scmp.ge.s32.totalorder %s1511_s21, 1  ;;  %p165_p8 = scmp.lt.s32.totalorder %s1511_s21, 3 }
   0xc   : > { %p1277_p9 = scmp.eq.s32.totalorder %s1569_s22, 0  ;;  %s176_s7 = sshll.u32 %s2051_s2, 4  ;;  %s177_s7 = int_to_ptr.hbm [resolvable:$true] %s176_s7 }
   0xd   : > { %p166_p10 = pnand %p1167_p7, %p165_p8  ;;  %s1513_s8 = smov [#allocation2]  }
   0xe   : > { %s178_s9 = sshll.u32 %s1513_s8, 4  ;;  %s1514_s10 = smov 256   ;;  %s179_s9 = int_to_ptr.vmem [resolvable:$true] %s178_s9 }
   0xf   : > { %p1269_p11 = pneg %p166_p10  ;;  %s1515_s11 = smov 16  }
  0x10   : > { %218 = sbr.rel (%p166_p10) target bundleno = 340 (0x154), region = 40 }
  0x11   : > { %p1270_p12 = pnand %p1277_p9, %p1269_p11 }
  0x13   : > { %1272 = dma.hbm_to_vmem [thread:$0]  (!%p1270_p12), %s177_s7, 4096, %s179_s9, [#allocation3], %s1514_s10, %s1514_s10, %s1515_s11  }
  0x15   : > { %1490 = dma.done.wait (%p1277_p9), [#allocation3], 4096  }
  0x16   : > { %1492 = vsyncadd (%p1277_p9), [#allocation3], 4294963200  ;;  %s1173_s12 = sshll.u32 %s1569_s22, 4  ;;  %v331_v0 = vld [vmem:[%s2052_s3 + $0x10] sm:$0xff]  ;;  %v332_v1 = vld [vmem:[%s2052_s3 + $0x18] sm:$0xff]  ;;  %vm333_vm0 = vcmask 130048  }
  0x17   : > { %p253_p13 = scmp.lt.s32.totalorder %s1173_s12, 31  ;;  %v312_v2 = vld [vmem:[#allocation2 + $0xf8] sm:$0xff]  ;;  %396 = vmatpush.msra.mxu0 %v331_v0  ;;  %461 = vmatpush.msra.mxu1 %v332_v1  ;;  %v329_v3 = vld [vmem:[%s2052_s3] sm:$0xff]  ;;  %v330_v4 = vld [vmem:[%s2052_s3 + $0x8] sm:$0xff]  ;;  %s249_s14 = sand.u32 1, %s1503_s19  }
  0x18   : > { %v310_v5 = vld [vmem:[#allocation2 + $0xe8] sm:$0xff]  ;;  %1247 = vmatpush.msra.mxu3 %v312_v2  ;;  %v308_v7 = vld [vmem:[#allocation2 + $0xd8] sm:$0xff]  ;;  %v311_v8 = vld [vmem:[#allocation2 + $0xf0] sm:$0xff]  ;;  %s1172_s15 = sshll.u32 %s249_s14, 7  ;;  %s1230_s17 = sshll.u32 %s1569_s22, 7 }
  0x19   : > { %s2062_s12 = smov (!%p253_p13, %s1173_s12), 31  ;;  %397 = vmatpush.msra.mxu0 %v329_v3  ;;  %462 = vmatpush.msra.mxu1 %v330_v4  ;;  %v309_v9 = vld [vmem:[#allocation2 + $0xe0] sm:$0xff]  ;;  %v306_v10 = vld [vmem:[#allocation2 + $0xc8] sm:$0xff]  ;;  %v307_v11 = vld [vmem:[#allocation2 + $0xd0] sm:$0xff]  ;;  %s1076_s26 = scalar_lea.hbm %s2054_s5, %s1230_s17 }
  0x1a   : > { %s1174_s13 = sshll.u32 %s2062_s12, 3  ;;  %1248 = vmatpush.msra.mxu3 %v310_v5  ;;  %1231 = vmatpush.msra.mxu2 %v311_v8  ;;  %v304_v12 = vld [vmem:[#allocation2 + $0xb8] sm:$0xff]  ;;  %v305_v13 = vld [vmem:[#allocation2 + $0xc0] sm:$0xff]  ;;  %v302_v14 = vld [vmem:[#allocation2 + $0xa8] sm:$0xff]  ;;  %s1079_s30 = sshll.u32 %s1076_s26, 4  ;;  %s1080_s30 = int_to_ptr.hbm [resolvable:$true] %s1079_s30 }
  0x1b   : > { %s1615_s16 = scalar_lea.vmem %s2050_s1, %s1174_s13  ;;  %577 = vmatpush.msrb.mxu1 %v312_v2  ;;  %512 = vmatpush.msrb.mxu0 %v311_v8  ;;  %v303_v16 = vld [vmem:[#allocation2 + $0xb0] sm:$0xff]  ;;  %v300_v17 = vld [vmem:[#allocation2 + $0x98] sm:$0xff]  ;;  %v301_v18 = vld [vmem:[#allocation2 + $0xa0] sm:$0xff]  ;;  %s1644_s11 = scalar_lea.vmem %s2049_s0, %s1174_s13 }
  0x1c   : > { %v313_v6 = vld [vmem:[%s1615_s16] sm:$0xff]  ;;  %1249 = vmatpush.msra.mxu3 %v308_v7  ;;  %1232 = vmatpush.msra.mxu2 %v309_v9  ;;  %v314_v15 = vld [vmem:[%s1615_s16 + $0x8] sm:$0xff]  ;;  %v299_v20 = vld [vmem:[#allocation2 + $0x90] sm:$0xff]  ;;  %s1065_s6 = scalar_lea.sflag [#allocation4], %s249_s14  ;;  %s1459_s7 = sshra.s32 %s1080_s30, 4  ;;  %s1460_s7 = int_to_ptr.hbm [resolvable:$true] %s1459_s7 }
  0x1d   : > { %1177 = vmatmul.msk.f32.vlgmr.msra.gmra.mxu0 %vm333_vm0, %v313_v6  ;;  %1193 = vmatmul.msk.f32.vlgmr.msra.gmra.mxu1 %vm333_vm0, %v313_v6  ;;  %v298_v19 = vld [vmem:[#allocation2 + $0x88] sm:$0xff]  ;;  %v296_v21 = vld [vmem:[#allocation2 + $0x78] sm:$0xff]  ;;  %v297_v22 = vld [vmem:[#allocation2 + $0x80] sm:$0xff]  ;;  %s1461_s8 = scalar_lea.hbm %s1460_s7, 128  ;;  %p1466_p3 = scmp.lt.s32.totalorder %s1460_s7, %s2054_s5 }
  0x1e   : > { %1250 = vmatpush.msra.mxu3 %v306_v10  ;;  %578 = vmatpush.msrb.mxu1 %v310_v5  ;;  %v294_v23 = vld [vmem:[#allocation2 + $0x68] sm:$0xff]  ;;  %v315_v24 = vld [vmem:[%s1615_s16 + $0x10] sm:$0xff]  ;;  %v292_v26 = vld [vmem:[#allocation2 + $0x58] sm:$0xff]  ;;  %p1462_p0 = scmp.ne.s32.totalorder %s1460_s7, %s1461_s8 }
  0x1f   : > { %1233 = vmatpush.msra.mxu2 %v307_v11  ;;  %513 = vmatpush.msrb.mxu0 %v309_v9  ;;  %v295_v25 = vld [vmem:[#allocation2 + $0x70] sm:$0xff]  ;;  %v293_v27 = vld [vmem:[#allocation2 + $0x60] sm:$0xff]  ;;  %v290_v28 = vld [vmem:[#allocation2 + $0x48] sm:$0xff] }
  0x20   : > { %1251 = vmatpush.msra.mxu3 %v304_v12  ;;  %579 = vmatpush.msrb.mxu1 %v308_v7  ;;  %v291_v29 = vld [vmem:[#allocation2 + $0x50] sm:$0xff]  ;;  %v288_v30 = vld [vmem:[#allocation2 + $0x38] sm:$0xff]  ;;  %v289_v31 = vld [vmem:[#allocation2 + $0x40] sm:$0xff]  ;;  %p1463_p1 = pnand %p1462_p0, %p1586_p5 }
  0x21   : > { %1234 = vmatpush.msra.mxu2 %v305_v13  ;;  %514 = vmatpush.msrb.mxu0 %v307_v11  ;;  %v286_v32 = vld [vmem:[#allocation2 + $0x28] sm:$0xff]  ;;  %v316_v33 = vld [vmem:[%s1615_s16 + $0x18] sm:$0xff]  ;;  %v287_v34 = vld [vmem:[#allocation2 + $0x30] sm:$0xff] }
  0x22   : > { %1252 = vmatpush.msra.mxu3 %v302_v14  ;;  %580 = vmatpush.msrb.mxu1 %v306_v10  ;;  %v284_v35 = vld [vmem:[#allocation2 + $0x18] sm:$0xff]  ;;  %v285_v36 = vld [vmem:[#allocation2 + $0x20] sm:$0xff]  ;;  %v282_v37 = vld [vmem:[#allocation2 + $0x8] sm:$0xff]  ;;  %p1464_p2 = pneg %p1463_p1 }
  0x23   : > { %1235 = vmatpush.msra.mxu2 %v303_v16  ;;  %515 = vmatpush.msrb.mxu0 %v305_v13  ;;  %v1649_v38 = vld [vmem:[%s1644_s11 + $0x8] sm:$0xff]  ;;  %v283_v39 = vld [vmem:[#allocation2 + $0x10] sm:$0xff]  ;;  %v281_v40 = vld [vmem:[#allocation2] sm:$0xff] }
  0x24   : > { %1253 = vmatpush.msra.mxu3 %v300_v17  ;;  %581 = vmatpush.msrb.mxu1 %v304_v12  ;;  %v317_v41 = vld [vmem:[%s1615_s16 + $0x20] sm:$0xff]  ;;  %v1657_v42 = vld [vmem:[%s1644_s11 + $0x10] sm:$0xff]  ;;  %v318_v43 = vld [vmem:[%s1615_s16 + $0x28] sm:$0xff] }
  0x25   : > { %1178 = vmatmul.msk.f32.gmra.mxu0 %vm333_vm0, %v314_v15  ;;  %1194 = vmatmul.msk.f32.gmra.mxu1 %vm333_vm0, %v314_v15  ;;  %v1665_v44 = vld [vmem:[%s1644_s11 + $0x18] sm:$0xff]  ;;  %v319_v45 = vld [vmem:[%s1615_s16 + $0x30] sm:$0xff]  ;;  %v1673_v46 = vld [vmem:[%s1644_s11 + $0x20] sm:$0xff] }
  0x26   : > { %1236 = vmatpush.msra.mxu2 %v301_v18  ;;  %1254 = vmatpush.msra.mxu3 %v298_v19  ;;  %v320_v47 = vld [vmem:[%s1615_s16 + $0x38] sm:$0xff]  ;;  %v1681_v48 = vld [vmem:[%s1644_s11 + $0x28] sm:$0xff]  ;;  %v321_v49 = vld [vmem:[%s1615_s16 + $0x40] sm:$0xff] }
  0x27   : > { %516 = vmatpush.msrb.mxu0 %v303_v16  ;;  %582 = vmatpush.msrb.mxu1 %v302_v14  ;;  %v1689_v50 = vld [vmem:[%s1644_s11 + $0x30] sm:$0xff]  ;;  %v322_v51 = vld [vmem:[%s1615_s16 + $0x48] sm:$0xff]  ;;  %v1697_v52 = vld [vmem:[%s1644_s11 + $0x38] sm:$0xff] }
  0x28   : > { %1237 = vmatpush.msra.mxu2 %v299_v20  ;;  %1255 = vmatpush.msra.mxu3 %v296_v21  ;;  %v323_v53 = vld [vmem:[%s1615_s16 + $0x50] sm:$0xff]  ;;  %v1705_v54 = vld [vmem:[%s1644_s11 + $0x40] sm:$0xff]  ;;  %v324_v55 = vld [vmem:[%s1615_s16 + $0x58] sm:$0xff] }
  0x29   : > { %517 = vmatpush.msrb.mxu0 %v301_v18  ;;  %583 = vmatpush.msrb.mxu1 %v300_v17  ;;  %v1713_v56 = vld [vmem:[%s1644_s11 + $0x48] sm:$0xff]  ;;  %v325_v57 = vld [vmem:[%s1615_s16 + $0x60] sm:$0xff]  ;;  %v1721_v58 = vld [vmem:[%s1644_s11 + $0x50] sm:$0xff] }
  0x2a   : > { %1238 = vmatpush.msra.mxu2 %v297_v22  ;;  %1256 = vmatpush.msra.mxu3 %v294_v23  ;;  %v326_v59 = vld [vmem:[%s1615_s16 + $0x68] sm:$0xff]  ;;  %v1729_v60 = vld [vmem:[%s1644_s11 + $0x58] sm:$0xff]  ;;  %v327_v61 = vld [vmem:[%s1615_s16 + $0x70] sm:$0xff] }
  0x2b   : > { %518 = vmatpush.msrb.mxu0 %v299_v20  ;;  %584 = vmatpush.msrb.mxu1 %v298_v19  ;;  %v1737_v62 = vld [vmem:[%s1644_s11 + $0x60] sm:$0xff]  ;;  %v328_v63 = vld [vmem:[%s1615_s16 + $0x78] sm:$0xff]  ;;  %v1745_v0 = vld [vmem:[%s1644_s11 + $0x68] sm:$0xff]  ;;  %s1812_s16 = scalar_lea.vmem [#allocation5], %s1172_s15 }
  0x2c   : > { %1239 = vmatpush.msra.mxu2 %v295_v25  ;;  %1257 = vmatpush.msra.mxu3 %v292_v26  ;;  %v1751_v2 = vld [vmem:[%s1644_s11] sm:$0xff]  ;;  %v279_v4 = vld [vmem:[%s1644_s11 + $0x70] sm:$0xff]  ;;  %v280_v7 = vld [vmem:[%s1644_s11 + $0x78] sm:$0xff]  ;;  %s1077_s22 = sshll.u32 %s1812_s16, 4  ;;  %s1078_s22 = int_to_ptr.vmem [resolvable:$true] %s1077_s22 }
  0x2d   : > { %1179 = vmatmul.msk.f32.gmra.mxu0 %vm333_vm0, %v315_v24  ;;  %1195 = vmatmul.msk.f32.gmra.mxu1 %vm333_vm0, %v315_v24  ;;  %v642_v12 = vld [vmem:[%s2053_s4] sm:$0x3] }
  0x2e   : > { %1240 = vmatpush.msra.mxu2 %v293_v27  ;;  %1258 = vmatpush.msra.mxu3 %v290_v28  ;;  %v1767_v15 = vperm.slane %v642_v12, 1 }
  0x2f   : > { %519 = vmatpush.msrb.mxu0 %v297_v22  ;;  %585 = vmatpush.msrb.mxu1 %v296_v21 }
  0x30   : > { %1241 = vmatpush.msra.mxu2 %v291_v29  ;;  %1259 = vmatpush.msra.mxu3 %v288_v30 }
  0x31   : > { %520 = vmatpush.msrb.mxu0 %v295_v25  ;;  %586 = vmatpush.msrb.mxu1 %v294_v23 }
  0x32   : > { %1242 = vmatpush.msra.mxu2 %v289_v31  ;;  %1260 = vmatpush.msra.mxu3 %v286_v32 }
  0x33   : > { %521 = vmatpush.msrb.mxu0 %v293_v27  ;;  %587 = vmatpush.msrb.mxu1 %v292_v26 }
  0x34   : > { %1243 = vmatpush.msra.mxu2 %v287_v34  ;;  %1261 = vmatpush.msra.mxu3 %v284_v35 }
  0x35   : > { %1180 = vmatmul.msk.f32.gmra.mxu0 %vm333_vm0, %v316_v33  ;;  %1196 = vmatmul.msk.f32.gmra.mxu1 %vm333_vm0, %v316_v33 }
  0x36   : > { %1244 = vmatpush.msra.mxu2 %v285_v36  ;;  %1262 = vmatpush.msra.mxu3 %v282_v37 }
  0x37   : > { %596 = vmatmul.f32.vlgmr.msra.gmra.mxu3 %v1649_v38  ;;  %588 = vmatpush.msrb.mxu1 %v290_v28  ;;  %v1775_v28 = vperm.slane %v642_v12, 0 }
  0x38   : > { %1245 = vmatpush.msra.mxu2 %v283_v39  ;;  %522 = vmatpush.msrb.mxu0 %v291_v29 }
  0x39   : > { %589 = vmatpush.msrb.mxu1 %v288_v30 }
  0x3a   : > { %1246 = vmatpush.msra.mxu2 %v281_v40  ;;  %523 = vmatpush.msrb.mxu0 %v289_v31 }
  0x3b   : > { %531 = vmatmul.f32.vlgmr.msra.gmra.mxu2 %v1649_v38  ;;  %590 = vmatpush.msrb.mxu1 %v286_v32 }
  0x3c   : > { %524 = vmatpush.msrb.mxu0 %v287_v34 }
  0x3d   : > { %1181 = vmatmul.msk.f32.gmra.mxu0 %vm333_vm0, %v317_v41  ;;  %1197 = vmatmul.msk.f32.gmra.mxu1 %vm333_vm0, %v317_v41 }
  0x3e   : > { %525 = vmatpush.msrb.mxu0 %v285_v36  ;;  %591 = vmatpush.msrb.mxu1 %v284_v35 }
  0x3f   : > { %599 = vmatmul.f32.gmra.mxu3 %v1657_v42 }
  0x40   : > { %526 = vmatpush.msrb.mxu0 %v283_v39  ;;  %592 = vmatpush.msrb.mxu1 %v282_v37 }
  0x42   : > { %527 = vmatpush.msrb.mxu0 %v281_v40 }
  0x43   : > { %534 = vmatmul.f32.gmra.mxu2 %v1657_v42 }
  0x45   : > { %1182 = vmatmul.msk.f32.gmra.mxu0 %vm333_vm0, %v318_v43  ;;  %1198 = vmatmul.msk.f32.gmra.mxu1 %vm333_vm0, %v318_v43 }
  0x47   : > { %602 = vmatmul.f32.gmra.mxu3 %v1665_v44 }
  0x4b   : > { %537 = vmatmul.f32.gmra.mxu2 %v1665_v44 }
  0x4d   : > { %1183 = vmatmul.msk.f32.gmra.mxu0 %vm333_vm0, %v319_v45  ;;  %1199 = vmatmul.msk.f32.gmra.mxu1 %vm333_vm0, %v319_v45 }
  0x4f   : > { %605 = vmatmul.f32.gmra.mxu3 %v1673_v46 }
  0x53   : > { %540 = vmatmul.f32.gmra.mxu2 %v1673_v46 }
  0x55   : > { %1184 = vmatmul.msk.f32.gmra.mxu0 %vm333_vm0, %v320_v47  ;;  %1200 = vmatmul.msk.f32.gmra.mxu1 %vm333_vm0, %v320_v47 }
  0x57   : > { %608 = vmatmul.f32.gmra.mxu3 %v1681_v48 }
  0x5b   : > { %543 = vmatmul.f32.gmra.mxu2 %v1681_v48 }
  0x5d   : > { %1185 = vmatmul.msk.f32.gmra.mxu0 %vm333_vm0, %v321_v49  ;;  %1201 = vmatmul.msk.f32.gmra.mxu1 %vm333_vm0, %v321_v49 }
  0x5f   : > { %611 = vmatmul.f32.gmra.mxu3 %v1689_v50 }
  0x63   : > { %546 = vmatmul.f32.gmra.mxu2 %v1689_v50 }
  0x65   : > { %1186 = vmatmul.msk.f32.gmra.mxu0 %vm333_vm0, %v322_v51  ;;  %1202 = vmatmul.msk.f32.gmra.mxu1 %vm333_vm0, %v322_v51 }
  0x67   : > { %614 = vmatmul.f32.gmra.mxu3 %v1697_v52 }
  0x6b   : > { %549 = vmatmul.f32.gmra.mxu2 %v1697_v52 }
  0x6d   : > { %1187 = vmatmul.msk.f32.gmra.mxu0 %vm333_vm0, %v323_v53  ;;  %1203 = vmatmul.msk.f32.gmra.mxu1 %vm333_vm0, %v323_v53 }
  0x6f   : > { %617 = vmatmul.f32.gmra.mxu3 %v1705_v54 }
  0x73   : > { %552 = vmatmul.f32.gmra.mxu2 %v1705_v54 }
  0x75   : > { %1188 = vmatmul.msk.f32.gmra.mxu0 %vm333_vm0, %v324_v55  ;;  %1204 = vmatmul.msk.f32.gmra.mxu1 %vm333_vm0, %v324_v55 }
  0x77   : > { %620 = vmatmul.f32.gmra.mxu3 %v1713_v56 }
  0x7b   : > { %555 = vmatmul.f32.gmra.mxu2 %v1713_v56 }
  0x7d   : > { %1189 = vmatmul.msk.f32.gmra.mxu0 %vm333_vm0, %v325_v57  ;;  %1205 = vmatmul.msk.f32.gmra.mxu1 %vm333_vm0, %v325_v57 }
  0x7f   : > { %623 = vmatmul.f32.gmra.mxu3 %v1721_v58 }
  0x83   : > { %558 = vmatmul.f32.gmra.mxu2 %v1721_v58 }
  0x85   : > { %1190 = vmatmul.msk.f32.gmra.mxu0 %vm333_vm0, %v326_v59  ;;  %1206 = vmatmul.msk.f32.gmra.mxu1 %vm333_vm0, %v326_v59 }
  0x87   : > { %626 = vmatmul.f32.gmra.mxu3 %v1729_v60 }
  0x8b   : > { %561 = vmatmul.f32.gmra.mxu2 %v1729_v60 }
  0x8d   : > { %1191 = vmatmul.msk.f32.gmra.mxu0 %vm333_vm0, %v327_v61  ;;  %1207 = vmatmul.msk.f32.gmra.mxu1 %vm333_vm0, %v327_v61 }
  0x8f   : > { %629 = vmatmul.f32.gmra.mxu3 %v1737_v62 }
  0x93   : > { %564 = vmatmul.f32.gmra.mxu2 %v1737_v62 }
  0x95   : > { %1192 = vmatmul.msk.f32.gmra.mxu0 %vm333_vm0, %v328_v63  ;;  %1208 = vmatmul.msk.f32.gmra.mxu1 %vm333_vm0, %v328_v63 }
  0x97   : > { %632 = vmatmul.f32.gmra.mxu3 %v1745_v0 }
  0x9a   : > { %v1748_v1 = vpop.f32.mrf.mxu0  ;;  %v1753_v3 = vpop.f32.mrf.mxu1 }
  0x9b   : > { %567 = vmatmul.f32.gmra.mxu2 %v1745_v0 }
  0x9d   : > { %528 = vmatmul.f32.vlgmr.msrb.gmra.mxu0 %v1751_v2  ;;  %593 = vmatmul.f32.vlgmr.msrb.gmra.mxu1 %v1751_v2 }
  0x9f   : > { %635 = vmatmul.f32.gmra.mxu3 %v279_v4 }
  0xa2   : > { %v402_v5 = vpop.f32.mrf.mxu0  ;;  %v467_v6 = vpop.f32.mrf.mxu1 }
  0xa3   : > { %570 = vmatmul.f32.gmra.mxu2 %v279_v4 }
  0xa7   : > { %638 = vmatmul.f32.gmra.mxu3 %v280_v7 }
  0xaa   : > { %v405_v8 = vpop.f32.mrf.mxu0  ;;  %v470_v9 = vpop.f32.mrf.mxu1 }
  0xab   : > { %573 = vmatmul.f32.gmra.mxu2 %v280_v7 }
  0xb2   : > { %v1760_v10 = vpop.f32.mrf.mxu0  ;;  %v473_v11 = vpop.f32.mrf.mxu1 }
  0xba   : > { %v1765_v13 = vpop.f32.mrf.mxu0  ;;  %v476_v14 = vpop.f32.mrf.mxu1 }
  0xbb   : > { %v597_v16 = vpop.f32.mrf.mxu3 }
  0xbc   : > { %v598_v17 = vadd.f32 %v597_v16, %v467_v6 }
  0xbe   : > { %v651_v18 = vadd.f32 %v1767_v15, %v598_v17  ;;  %v532_v19 = vpop.f32.mrf.mxu2 }
  0xbf   : > { %v533_v27 = vadd.f32 %v532_v19, %v402_v5 }
  0xc0   : > { %v1210_v20 = vmul.f32 -1.442695, %v651_v18 }
  0xc1   : > { %v650_v34 = vadd.f32 %v1775_v28, %v533_v27 }
  0xc2   : > { %v1770_v21 = vpop.f32.mrf.mxu0  ;;  %v1772_v22 = vpop.f32.mrf.mxu1  ;;  %1317 = vpow2.f32 %v1210_v20 }
  0xc3   : > { %v600_v23 = vpop.f32.mrf.mxu3 }
  0xc4   : > { %v601_v24 = vadd.f32 %v600_v23, %v470_v9 }
  0xc6   : > { %v653_v25 = vadd.f32 %v1767_v15, %v601_v24  ;;  %v535_v26 = vpop.f32.mrf.mxu2 }
  0xc7   : > { %v536_v49 = vadd.f32 %v535_v26, %v405_v8 }
  0xc8   : > { %v1318_v29 = vpop.eup %1317  ;;  %v1211_v30 = vmul.f32 -1.442695, %v653_v25 }
  0xc9   : > { %v745_v32 = vadd.f32 1.0, %v1318_v29  ;;  %v652_v4 = vadd.f32 %v1775_v28, %v536_v49 }
  0xca   : > { %v1777_v31 = vpop.f32.mrf.mxu0  ;;  %v1779_v33 = vpop.f32.mrf.mxu1  ;;  %1319 = vpow2.f32 %v1211_v30 }
  0xcb   : > { %1321 = vrcp.f32 %v745_v32  ;;  %v603_v35 = vpop.f32.mrf.mxu3  ;;  %v786_v63 = vand.u32 2147483648, %v745_v32  ;;  %v784_v6 = vand.u32 2147483647, %v745_v32  ;;  %vm780_vm2 = vweird.f32 %v745_v32 }
  0xcc   : > { %v604_v36 = vadd.f32 %v603_v35, %v473_v11  ;;  %1323 = vtanh.f32 %v650_v34 }
  0xcd   : > { %v787_v18 = vor.u32 1.1754944e-38, %v786_v63  ;;  %vm785_vm4 = vcmp.eq.f32.partialorder %v784_v6, 8.507059e+37 }
  0xce   : > { %v655_v37 = vadd.f32 %v1767_v15, %v604_v36  ;;  %v538_v39 = vpop.f32.mrf.mxu2 }
  0xcf   : > { %v539_v20 = vadd.f32 %v538_v39, %v1760_v10 }
  0xd0   : > { %v1320_v40 = vpop.eup %1319  ;;  %v1212_v41 = vmul.f32 -1.442695, %v655_v37 }
  0xd1   : > { %v1322_v45 = vpop.eup %1321  ;;  %v1785_v47 = vadd.f32 1.0, %v1320_v40  ;;  %v654_v34 = vadd.f32 %v1775_v28, %v539_v20 }
  0xd2   : > { %v1783_v43 = vpop.f32.mrf.mxu0  ;;  %v1787_v51 = vpop.f32.mrf.mxu1  ;;  %v776_v53 = vmul.f32 %v1322_v45, %v745_v32  ;;  %1325 = vpow2.f32 %v1212_v41  ;;  %vm781_vm1 = vweird.f32 %v1322_v45 }
  0xd3   : > { %1327 = vrcp.f32 %v1785_v47  ;;  %v606_v55 = vpop.f32.mrf.mxu3  ;;  %v1324_v61 = vpop.eup %1323  ;;  %vm782_vm3 = vmor %vm780_vm2, %vm781_vm1  ;;  %v801_v32 = vand.u32 2147483648, %v1785_v47  ;;  %v799_v37 = vand.u32 2147483647, %v1785_v47  ;;  %vm795_vm6 = vweird.f32 %v1785_v47 }
  0xd4   : > { %v777_v57 = vsub.f32 1.0, %v776_v53  ;;  %v607_v59 = vadd.f32 %v606_v55, %v476_v14  ;;  %v1001_v12 = vsub.f32 %v1324_v61, %v1649_v38  ;;  %1329 = vtanh.f32 %v652_v4 }
  0xd5   : > { %v802_v55 = vor.u32 1.1754944e-38, %v801_v32  ;;  %vm800_vm8 = vcmp.eq.f32.partialorder %v799_v37, 8.507059e+37 }
  0xd6   : > { %v778_v5 = vmul.f32 %v1322_v45, %v777_v57  ;;  %v657_v7 = vadd.f32 %v1767_v15, %v607_v59  ;;  %v541_v8 = vpop.f32.mrf.mxu2 }
  0xd8   : > { %v1326_v9 = vpop.eup %1325  ;;  %v779_v11 = vadd.f32 %v1322_v45, %v778_v5  ;;  %v1213_v16 = vmul.f32 -1.442695, %v657_v7 }
  0xd9   : > { %v1328_v14 = vpop.eup %1327  ;;  %v1796_v19 = vadd.f32 1.0, %v1326_v9 }
  0xda   : > { %v1794_v17 = vpop.f32.mrf.mxu0  ;;  %v1799_v23 = vpop.f32.mrf.mxu1  ;;  %v791_v24 = vmul.f32 %v1328_v14, %v1785_v47  ;;  %v783_v25 = vsel %vm782_vm3, %v1322_v45, %v779_v11  ;;  %1331 = vpow2.f32 %v1213_v16  ;;  %vm796_vm5 = vweird.f32 %v1328_v14 }
  0xdb   : > { %v788_v26 = vsel %vm785_vm4, %v787_v18, %v783_v25  ;;  %1333 = vrcp.f32 %v1796_v19  ;;  %v609_v27 = vpop.f32.mrf.mxu3  ;;  %v1330_v40 = vpop.eup %1329  ;;  %vm797_vm7 = vmor %vm795_vm6, %vm796_vm5  ;;  %v816_v9 = vand.u32 2147483648, %v1796_v19  ;;  %vm810_vm10 = vweird.f32 %v1796_v19 }
  0xdc   : > { %v792_v29 = vsub.f32 1.0, %v791_v24  ;;  %v1017_v30 = vmul.f32 %v1001_v12, %v788_v26  ;;  %v610_v10 = vadd.f32 %v609_v27, %v1772_v22  ;;  %v542_v22 = vadd.f32 %v541_v8, %v1765_v13 }
  0xdd   : > { %1335 = vtanh.f32 %v654_v34  ;;  %v1002_v4 = vsub.f32 %v1330_v40, %v1657_v42 }
  0xde   : > { %v793_v35 = vmul.f32 %v1328_v14, %v792_v29  ;;  %v1033_v36 = vadd.f32 %v1017_v30, %v1649_v38  ;;  %v544_v39 = vpop.f32.mrf.mxu2  ;;  %v659_v41 = vadd.f32 %v1767_v15, %v610_v10  ;;  %v656_v8 = vadd.f32 %v1775_v28, %v542_v22 }
  0xe0   : > { %v1332_v45 = vpop.eup %1331  ;;  %1049 = vst [vmem:[%s1812_s16 + $0x8] sm:$0xff] %v1033_v36  ;;  %v794_v49 = vadd.f32 %v1328_v14, %v793_v35  ;;  %v1214_v59 = vmul.f32 -1.442695, %v659_v41 }
  0xe1   : > { %v1334_v38 = vpop.eup %1333  ;;  %v1818_v57 = vadd.f32 1.0, %v1332_v45 }
  0xe2   : > { %v1816_v53 = vpop.f32.mrf.mxu0  ;;  %v1820_v61 = vpop.f32.mrf.mxu1  ;;  %v806_v47 = vmul.f32 %v1334_v38, %v1796_v19  ;;  %v798_v63 = vsel %vm797_vm7, %v1328_v14, %v794_v49  ;;  %vm811_vm9 = vweird.f32 %v1334_v38  ;;  %v814_v14 = vand.u32 2147483647, %v1796_v19 }
  0xe3   : > { %v803_v5 = vsel %vm800_vm8, %v802_v55, %v798_v63  ;;  %1337 = vrcp.f32 %v1818_v57  ;;  %v612_v13 = vpop.f32.mrf.mxu3  ;;  %v1336_v20 = vpop.eup %1335  ;;  %vm812_vm11 = vmor %vm810_vm10, %vm811_vm9  ;;  %vm825_vm14 = vweird.f32 %v1818_v57 }
  0xe4   : > { %v807_v6 = vsub.f32 1.0, %v806_v47  ;;  %v1018_v7 = vmul.f32 %v1002_v4, %v803_v5  ;;  %1339 = vpow2.f32 %v1214_v59  ;;  %v613_v11 = vadd.f32 %v612_v13, %v1779_v33 }
  0xe5   : > { %1341 = vtanh.f32 %v656_v8  ;;  %v817_v33 = vor.u32 1.1754944e-38, %v816_v9  ;;  %vm815_vm12 = vcmp.eq.f32.partialorder %v814_v14, 8.507059e+37  ;;  %v1003_v19 = vsub.f32 %v1336_v20, %v1665_v44 }
  0xe6   : > { %v808_v12 = vmul.f32 %v1334_v38, %v807_v6  ;;  %v1034_v16 = vadd.f32 %v1018_v7, %v1657_v42  ;;  %v547_v18 = vpop.f32.mrf.mxu2  ;;  %v661_v24 = vadd.f32 %v1767_v15, %v613_v11  ;;  %v545_v42 = vadd.f32 %v544_v39, %v1770_v21 }
  0xe7   : > { %v831_v21 = vand.u32 2147483648, %v1818_v57  ;;  %v829_v39 = vand.u32 2147483647, %v1818_v57  ;;  %v548_v6 = vadd.f32 %v547_v18, %v1777_v31 }
  0xe8   : > { %1050 = vst [vmem:[%s1812_s16 + $0x10] sm:$0xff] %v1034_v16  ;;  %v809_v25 = vadd.f32 %v1334_v38, %v808_v12  ;;  %v1215_v29 = vmul.f32 -1.442695, %v661_v24  ;;  %v658_v49 = vadd.f32 %v1775_v28, %v545_v42 }
  0xe9   : > { %v1338_v27 = vpop.eup %1337  ;;  %v832_v5 = vor.u32 1.1754944e-38, %v831_v21  ;;  %vm830_vm0 = vcmp.eq.f32.partialorder %v829_v39, 8.507059e+37  ;;  %v660_v31 = vadd.f32 %v1775_v28, %v548_v6 }
  0xea   : > { %v1833_v26 = vpop.f32.mrf.mxu0  ;;  %v1836_v30 = vpop.f32.mrf.mxu1  ;;  %v821_v34 = vmul.f32 %v1338_v27, %v1818_v57  ;;  %v813_v10 = vsel %vm812_vm11, %v1334_v38, %v809_v25  ;;  %1343 = vpow2.f32 %v1215_v29  ;;  %vm826_vm13 = vweird.f32 %v1338_v27 }
  0xeb   : > { %v1340_v32 = vpop.eup %1339  ;;  %v818_v35 = vsel %vm815_vm12, %v817_v33, %v813_v10  ;;  %v615_v37 = vpop.f32.mrf.mxu3  ;;  %vm827_vm15 = vmor %vm825_vm14, %vm826_vm13 }
  0xec   : > { %v1840_v36 = vadd.f32 1.0, %v1340_v32  ;;  %v822_v40 = vsub.f32 1.0, %v821_v34  ;;  %v1019_v41 = vmul.f32 %v1003_v19, %v818_v35  ;;  %v616_v45 = vadd.f32 %v615_v37, %v1787_v51  ;;  %v1342_v22 = vpop.eup %1341 }
  0xed   : > { %v1004_v13 = vsub.f32 %v1342_v22, %v1673_v46 }
  0xee   : > { %1345 = vrcp.f32 %v1840_v36  ;;  %v823_v38 = vmul.f32 %v1338_v27, %v822_v40  ;;  %v1035_v55 = vadd.f32 %v1019_v41, %v1665_v44  ;;  %v663_v59 = vadd.f32 %v1767_v15, %v616_v45  ;;  %v550_v47 = vpop.f32.mrf.mxu2 }
  0xef   : > { %1347 = vtanh.f32 %v658_v49  ;;  %v846_v33 = vand.u32 2147483648, %v1840_v36  ;;  %v844_v29 = vand.u32 2147483647, %v1840_v36  ;;  %v551_v10 = vadd.f32 %v550_v47, %v1783_v43 }
  0xf0   : > { %1051 = vst [vmem:[%s1812_s16 + $0x18] sm:$0xff] %v1035_v55  ;;  %v824_v51 = vadd.f32 %v1338_v27, %v823_v38  ;;  %v1216_v63 = vmul.f32 -1.442695, %v663_v59  ;;  %v1344_v4 = vpop.eup %1343  ;;  %vm840_vm2 = vweird.f32 %v1840_v36 }
  0xf1   : > { %v1857_v9 = vadd.f32 1.0, %v1344_v4  ;;  %v847_v41 = vor.u32 1.1754944e-38, %v846_v33  ;;  %vm845_vm4 = vcmp.eq.f32.partialorder %v844_v29, 8.507059e+37  ;;  %v662_v49 = vadd.f32 %v1775_v28, %v551_v10 }
  0xf2   : > { %v1853_v7 = vpop.f32.mrf.mxu0  ;;  %v1855_v44 = vpop.f32.mrf.mxu1  ;;  %v828_v8 = vsel %vm827_vm15, %v1338_v27, %v824_v51  ;;  %1349 = vpow2.f32 %v1216_v63 }
  0xf3   : > { %v833_v11 = vsel %vm830_vm0, %v832_v5, %v828_v8  ;;  %v618_v12 = vpop.f32.mrf.mxu3  ;;  %1351 = vrcp.f32 %v1857_v9  ;;  %v861_v55 = vand.u32 2147483648, %v1857_v9  ;;  %v859_v47 = vand.u32 2147483647, %v1857_v9 }
  0xf4   : > { %v1346_v57 = vpop.eup %1345  ;;  %v1020_v14 = vmul.f32 %v1004_v13, %v833_v11  ;;  %v619_v24 = vadd.f32 %v618_v12, %v1799_v23  ;;  %1353 = vtanh.f32 %v660_v31  ;;  %vm855_vm6 = vweird.f32 %v1857_v9 }
  0xf5   : > { %v836_v16 = vmul.f32 %v1346_v57, %v1840_v36  ;;  %v1348_v27 = vpop.eup %1347  ;;  %vm841_vm1 = vweird.f32 %v1346_v57  ;;  %vm860_vm8 = vcmp.eq.f32.partialorder %v859_v47, 8.507059e+37 }
  0xf6   : > { %v1036_v20 = vadd.f32 %v1020_v14, %v1673_v46  ;;  %v553_v25 = vpop.f32.mrf.mxu2  ;;  %v665_v34 = vadd.f32 %v1767_v15, %v619_v24  ;;  %vm842_vm3 = vmor %vm840_vm2, %vm841_vm1  ;;  %v1005_v45 = vsub.f32 %v1348_v27, %v1681_v48 }
  0xf7   : > { %v837_v18 = vsub.f32 1.0, %v836_v16  ;;  %v862_v16 = vor.u32 1.1754944e-38, %v861_v55 }
  0xf8   : > { %v1350_v42 = vpop.eup %1349  ;;  %1052 = vst [vmem:[%s1812_s16 + $0x20] sm:$0xff] %v1036_v20  ;;  %v1217_v37 = vmul.f32 -1.442695, %v665_v34 }
  0xf9   : > { %v838_v32 = vmul.f32 %v1346_v57, %v837_v18  ;;  %v1869_v19 = vadd.f32 1.0, %v1350_v42  ;;  %v1352_v23 = vpop.eup %1351 }
  0xfa   : > { %v1871_v46 = vpop.f32.mrf.mxu1  ;;  %v851_v40 = vmul.f32 %v1352_v23, %v1857_v9  ;;  %v1877_v21 = vpop.f32.mrf.mxu0  ;;  %vm856_vm5 = vweird.f32 %v1352_v23 }
  0xfb   : > { %v839_v35 = vadd.f32 %v1346_v57, %v838_v32  ;;  %1355 = vrcp.f32 %v1869_v19  ;;  %v621_v43 = vpop.f32.mrf.mxu3  ;;  %v1354_v63 = vpop.eup %1353  ;;  %vm857_vm7 = vmor %vm855_vm6, %vm856_vm5  ;;  %v876_v33 = vand.u32 2147483648, %v1869_v19  ;;  %v874_v10 = vand.u32 2147483647, %v1869_v19 }
  0xfc   : > { %1357 = vpow2.f32 %v1217_v37  ;;  %v852_v22 = vsub.f32 1.0, %v851_v40  ;;  %v622_v38 = vadd.f32 %v621_v43, %v1820_v61  ;;  %v1006_v14 = vsub.f32 %v1354_v63, %v1689_v50 }
  0xfd   : > { %v843_v39 = vsel %vm842_vm3, %v1346_v57, %v839_v35  ;;  %1359 = vtanh.f32 %v662_v49  ;;  %vm870_vm10 = vweird.f32 %v1869_v19  ;;  %vm875_vm12 = vcmp.eq.f32.partialorder %v874_v10, 8.507059e+37 }
  0xfe   : > { %v848_v36 = vsel %vm845_vm4, %v847_v41, %v843_v39  ;;  %v556_v51 = vpop.f32.mrf.mxu2  ;;  %v853_v4 = vmul.f32 %v1352_v23, %v852_v22  ;;  %v667_v5 = vadd.f32 %v1767_v15, %v622_v38 }
  0xff   : > { %v1021_v59 = vmul.f32 %v1005_v45, %v848_v36  ;;  %v557_v40 = vadd.f32 %v556_v51, %v1816_v53  ;;  %v877_v45 = vor.u32 1.1754944e-38, %v876_v33 }
 0x100   : > { %v854_v8 = vadd.f32 %v1352_v23, %v853_v4  ;;  %v1218_v61 = vmul.f32 -1.442695, %v667_v5 }
 0x101   : > { %v1037_v13 = vadd.f32 %v1021_v59, %v1681_v48  ;;  %v1356_v6 = vpop.eup %1355  ;;  %v554_v48 = vadd.f32 %v553_v25, %v1794_v17  ;;  %v666_v55 = vadd.f32 %v1775_v28, %v557_v40 }
 0x102   : > { %v1886_v57 = vpop.f32.mrf.mxu1  ;;  %v1358_v11 = vpop.eup %1357  ;;  %v866_v12 = vmul.f32 %v1356_v6, %v1869_v19  ;;  %v858_v31 = vsel %vm857_vm7, %v1352_v23, %v854_v8  ;;  %1361 = vpow2.f32 %v1218_v61  ;;  %vm871_vm9 = vweird.f32 %v1356_v6 }
 0x103   : > { %1053 = vst [vmem:[%s1812_s16 + $0x28] sm:$0xff] %v1037_v13  ;;  %v1891_v18 = vadd.f32 1.0, %v1358_v11  ;;  %v624_v9 = vpop.f32.mrf.mxu3  ;;  %v863_v24 = vsel %vm860_vm8, %v862_v16, %v858_v31  ;;  %v1897_v42 = vpop.f32.mrf.mxu0  ;;  %vm872_vm11 = vmor %vm870_vm10, %vm871_vm9 }
 0x104   : > { %v867_v20 = vsub.f32 1.0, %v866_v12  ;;  %v625_v27 = vadd.f32 %v624_v9, %v1836_v30  ;;  %v1022_v29 = vmul.f32 %v1006_v14, %v863_v24  ;;  %v1360_v32 = vpop.eup %1359  ;;  %v664_v30 = vadd.f32 %v1775_v28, %v554_v48 }
 0x105   : > { %1363 = vrcp.f32 %v1891_v18  ;;  %v1007_v43 = vsub.f32 %v1360_v32, %v1697_v52  ;;  %v891_v4 = vand.u32 2147483648, %v1891_v18  ;;  %v889_v61 = vand.u32 2147483647, %v1891_v18 }
 0x106   : > { %v868_v34 = vmul.f32 %v1356_v6, %v867_v20  ;;  %v669_v17 = vadd.f32 %v1767_v15, %v625_v27  ;;  %v559_v25 = vpop.f32.mrf.mxu2  ;;  %v1038_v23 = vadd.f32 %v1022_v29, %v1689_v50  ;;  %vm885_vm14 = vweird.f32 %v1891_v18 }
 0x107   : > { %v560_v63 = vadd.f32 %v559_v25, %v1833_v26  ;;  %v892_v9 = vor.u32 1.1754944e-38, %v891_v4  ;;  %vm890_vm0 = vcmp.eq.f32.partialorder %v889_v61, 8.507059e+37 }
 0x108   : > { %v869_v35 = vadd.f32 %v1356_v6, %v868_v34  ;;  %v1219_v37 = vmul.f32 -1.442695, %v669_v17  ;;  %v1362_v41 = vpop.eup %1361  ;;  %1054 = vst [vmem:[%s1812_s16 + $0x30] sm:$0xff] %v1038_v23 }
 0x109   : > { %v1909_v22 = vadd.f32 1.0, %v1362_v41  ;;  %v668_v31 = vadd.f32 %v1775_v28, %v560_v63 }
 0x10a   : > { %v1907_v39 = vpop.f32.mrf.mxu1  ;;  %v873_v49 = vsel %vm872_vm11, %v1356_v6, %v869_v35  ;;  %1365 = vpow2.f32 %v1219_v37 }
 0x10b   : > { %v1364_v50 = vpop.eup %1363  ;;  %v878_v36 = vsel %vm875_vm12, %v877_v45, %v873_v49  ;;  %1367 = vtanh.f32 %v664_v30  ;;  %v627_v19 = vpop.f32.mrf.mxu3  ;;  %v906_v34 = vand.u32 2147483648, %v1909_v22  ;;  %v904_v25 = vand.u32 2147483647, %v1909_v22 }
 0x10c   : > { %v881_v53 = vmul.f32 %v1364_v50, %v1891_v18  ;;  %v1023_v38 = vmul.f32 %v1007_v43, %v878_v36  ;;  %1369 = vrcp.f32 %v1909_v22  ;;  %v628_v59 = vadd.f32 %v627_v19, %v1855_v44  ;;  %v1918_v5 = vpop.f32.mrf.mxu0 }
 0x10d   : > { %vm886_vm13 = vweird.f32 %v1364_v50  ;;  %1371 = vtanh.f32 %v666_v55  ;;  %vm900_vm2 = vweird.f32 %v1909_v22  ;;  %vm905_vm4 = vcmp.eq.f32.partialorder %v904_v25, 8.507059e+37 }
 0x10e   : > { %v882_v47 = vsub.f32 1.0, %v881_v53  ;;  %v1039_v51 = vadd.f32 %v1023_v38, %v1697_v52  ;;  %v671_v13 = vadd.f32 %v1767_v15, %v628_v59  ;;  %v562_v11 = vpop.f32.mrf.mxu2  ;;  %vm887_vm15 = vmor %vm885_vm14, %vm886_vm13 }
 0x10f   : > { %v563_v36 = vadd.f32 %v562_v11, %v1853_v7 }
 0x110   : > { %v1366_v6 = vpop.eup %1365  ;;  %v883_v8 = vmul.f32 %v1364_v50, %v882_v47  ;;  %1055 = vst [vmem:[%s1812_s16 + $0x38] sm:$0xff] %v1039_v51  ;;  %v1220_v52 = vmul.f32 -1.442695, %v671_v13 }
 0x111   : > { %v1368_v44 = vpop.eup %1367  ;;  %v1923_v12 = vadd.f32 1.0, %v1366_v6  ;;  %v670_v6 = vadd.f32 %v1775_v28, %v563_v36 }
 0x112   : > { %v1925_v16 = vpop.f32.mrf.mxu1  ;;  %v1370_v26 = vpop.eup %1369  ;;  %v884_v14 = vadd.f32 %v1364_v50, %v883_v8  ;;  %v1008_v27 = vsub.f32 %v1368_v44, %v1705_v54 }
 0x113   : > { %v896_v48 = vmul.f32 %v1370_v26, %v1909_v22  ;;  %1373 = vrcp.f32 %v1923_v12  ;;  %v630_v20 = vpop.f32.mrf.mxu3  ;;  %v1372_v18 = vpop.eup %1371  ;;  %vm901_vm1 = vweird.f32 %v1370_v26  ;;  %v921_v4 = vand.u32 2147483648, %v1923_v12 }
 0x114   : > { %v888_v24 = vsel %vm887_vm15, %v1364_v50, %v884_v14  ;;  %1375 = vpow2.f32 %v1220_v52  ;;  %v631_v32 = vadd.f32 %v630_v20, %v1871_v46  ;;  %v1009_v46 = vsub.f32 %v1372_v18, %v1713_v56  ;;  %v1939_v40 = vpop.f32.mrf.mxu0  ;;  %vm902_vm3 = vmor %vm900_vm2, %vm901_vm1 }
 0x115   : > { %v897_v33 = vsub.f32 1.0, %v896_v48  ;;  %v893_v29 = vsel %vm890_vm0, %v892_v9, %v888_v24  ;;  %1377 = vtanh.f32 %v668_v31  ;;  %v907_v50 = vor.u32 1.1754944e-38, %v906_v34 }
 0x116   : > { %v1024_v10 = vmul.f32 %v1008_v27, %v893_v29  ;;  %v673_v23 = vadd.f32 %v1767_v15, %v631_v32  ;;  %v565_v19 = vpop.f32.mrf.mxu2  ;;  %v919_v13 = vand.u32 2147483647, %v1923_v12  ;;  %vm915_vm6 = vweird.f32 %v1923_v12 }
 0x117   : > { %v898_v17 = vmul.f32 %v1370_v26, %v897_v33  ;;  %v566_v31 = vadd.f32 %v565_v19, %v1877_v21 }
 0x118   : > { %v1040_v30 = vadd.f32 %v1024_v10, %v1705_v54  ;;  %v1221_v41 = vmul.f32 -1.442695, %v673_v23  ;;  %vm920_vm8 = vcmp.eq.f32.partialorder %v919_v13, 8.507059e+37 }
 0x119   : > { %v1374_v35 = vpop.eup %1373  ;;  %v899_v37 = vadd.f32 %v1370_v26, %v898_v17  ;;  %v672_v32 = vadd.f32 %v1775_v28, %v566_v31 }
 0x11a   : > { %v594_v45 = vpop.f32.mrf.mxu1  ;;  %v1376_v43 = vpop.eup %1375  ;;  %1056 = vst [vmem:[%s1812_s16 + $0x40] sm:$0xff] %v1040_v30  ;;  %v911_v49 = vmul.f32 %v1374_v35, %v1923_v12  ;;  %1379 = vpow2.f32 %v1221_v41  ;;  %vm916_vm5 = vweird.f32 %v1374_v35 }
 0x11b   : > { %v595_v54 = vadd.f32 %v594_v45, %v1753_v3  ;;  %v903_v53 = vsel %vm902_vm3, %v1370_v26, %v899_v37  ;;  %v1945_v22 = vadd.f32 1.0, %v1376_v43  ;;  %v633_v38 = vpop.f32.mrf.mxu3  ;;  %v1378_v55 = vpop.eup %1377  ;;  %vm917_vm7 = vmor %vm915_vm6, %vm916_vm5  ;;  %v922_v26 = vor.u32 1.1754944e-38, %v921_v4 }
 0x11c   : > { %v912_v59 = vsub.f32 1.0, %v911_v49  ;;  %v908_v47 = vsel %vm905_vm4, %v907_v50, %v903_v53  ;;  %v634_v63 = vadd.f32 %v633_v38, %v1886_v57  ;;  %v1010_v57 = vsub.f32 %v1378_v55, %v1721_v58  ;;  %v529_v24 = vpop.f32.mrf.mxu0 }
 0x11d   : > { %v649_v51 = vadd.f32 %v1767_v15, %v595_v54  ;;  %v1025_v7 = vmul.f32 %v1009_v46, %v908_v47  ;;  %1381 = vrcp.f32 %v1945_v22  ;;  %v530_v34 = vadd.f32 %v529_v24, %v1748_v1 }
 0x11e   : > { %v913_v3 = vmul.f32 %v1374_v35, %v912_v59  ;;  %v675_v11 = vadd.f32 %v1767_v15, %v634_v63  ;;  %v568_v29 = vpop.f32.mrf.mxu2  ;;  %v936_v25 = vand.u32 2147483648, %v1945_v22  ;;  %v934_v23 = vand.u32 2147483647, %v1945_v22 }
 0x11f   : > { %v1041_v8 = vadd.f32 %v1025_v7, %v1713_v56  ;;  %v1209_v61 = vmul.f32 -1.442695, %v649_v51  ;;  %vm930_vm10 = vweird.f32 %v1945_v22  ;;  %v648_v45 = vadd.f32 %v1775_v28, %v530_v34 }
 0x120   : > { %v914_v44 = vadd.f32 %v1374_v35, %v913_v3  ;;  %v1380_v52 = vpop.eup %1379  ;;  %v1222_v14 = vmul.f32 -1.442695, %v675_v11  ;;  %v937_v49 = vor.u32 1.1754944e-38, %v936_v25  ;;  %vm935_vm12 = vcmp.eq.f32.partialorder %v934_v23, 8.507059e+37 }
 0x121   : > { %1057 = vst [vmem:[%s1812_s16 + $0x48] sm:$0xff] %v1041_v8  ;;  %1383 = vpow2.f32 %v1209_v61  ;;  %v1959_v9 = vadd.f32 1.0, %v1380_v52 }
 0x122   : > { %v918_v48 = vsel %vm917_vm7, %v1374_v35, %v914_v44  ;;  %1385 = vtanh.f32 %v670_v6 }
 0x123   : > { %v1382_v56 = vpop.eup %1381  ;;  %v923_v20 = vsel %vm920_vm8, %v922_v26, %v918_v48  ;;  %1387 = vpow2.f32 %v1222_v14  ;;  %v636_v12 = vpop.f32.mrf.mxu3  ;;  %v951_v59 = vand.u32 2147483648, %v1959_v9  ;;  %v949_v51 = vand.u32 2147483647, %v1959_v9 }
 0x124   : > { %v926_v27 = vmul.f32 %v1382_v56, %v1945_v22  ;;  %v1026_v33 = vmul.f32 %v1010_v57, %v923_v20  ;;  %1389 = vrcp.f32 %v1959_v9  ;;  %v637_v10 = vadd.f32 %v636_v12, %v1907_v39 }
 0x125   : > { %vm931_vm9 = vweird.f32 %v1382_v56  ;;  %1391 = vtanh.f32 %v672_v32  ;;  %vm945_vm14 = vweird.f32 %v1959_v9  ;;  %vm950_vm0 = vcmp.eq.f32.partialorder %v949_v51, 8.507059e+37 }
 0x126   : > { %v927_v21 = vsub.f32 1.0, %v926_v27  ;;  %v1042_v18 = vadd.f32 %v1026_v33, %v1721_v58  ;;  %v677_v46 = vadd.f32 %v1767_v15, %v637_v10  ;;  %v569_v58 = vadd.f32 %v568_v29, %v1897_v42  ;;  %vm932_vm11 = vmor %vm930_vm10, %vm931_vm9  ;;  %v571_v63 = vpop.f32.mrf.mxu2 }
 0x127   : > { %v1384_v17 = vpop.eup %1383  ;;  %v952_v61 = vor.u32 1.1754944e-38, %v951_v59  ;;  %v572_v44 = vadd.f32 %v571_v63, %v1918_v5  ;;  %v1413_v63 = vld [vmem:[%s1644_s11 + $0x70] sm:$0xff] }
 0x128   : > { %v1386_v30 = vpop.eup %1385  ;;  %v928_v35 = vmul.f32 %v1382_v56, %v927_v21  ;;  %1058 = vst [vmem:[%s1812_s16 + $0x50] sm:$0xff] %v1042_v18  ;;  %v1970_v37 = vadd.f32 1.0, %v1384_v17  ;;  %v1223_v42 = vmul.f32 -1.442695, %v677_v46  ;;  %v674_v55 = vadd.f32 %v1775_v28, %v569_v58 }
 0x129   : > { %v1388_v41 = vpop.eup %1387  ;;  %v1011_v50 = vsub.f32 %v1386_v30, %v1729_v60  ;;  %v676_v27 = vadd.f32 %v1775_v28, %v572_v44 }
 0x12a   : > { %v1390_v1 = vpop.eup %1389  ;;  %v929_v39 = vadd.f32 %v1382_v56, %v928_v35  ;;  %1393 = vrcp.f32 %v1970_v37  ;;  %v1979_v36 = vadd.f32 1.0, %v1388_v41  ;;  %v771_v31 = vand.u32 2147483648, %v1970_v37 }
 0x12b   : > { %v941_v43 = vmul.f32 %v1390_v1, %v1959_v9  ;;  %v639_v54 = vpop.f32.mrf.mxu3  ;;  %v1392_v4 = vpop.eup %1391  ;;  %vm946_vm13 = vweird.f32 %v1390_v1  ;;  %vm765_vm2 = vweird.f32 %v1970_v37 }
 0x12c   : > { %v933_v19 = vsel %vm932_vm11, %v1382_v56, %v929_v39  ;;  %v640_v53 = vadd.f32 %v639_v54, %v1925_v16  ;;  %1395 = vrcp.f32 %v1979_v36  ;;  %vm947_vm15 = vmor %vm945_vm14, %vm946_vm13  ;;  %v966_v32 = vand.u32 2147483648, %v1979_v36 }
 0x12d   : > { %v942_v22 = vsub.f32 1.0, %v941_v43  ;;  %v938_v38 = vsel %vm935_vm12, %v937_v49, %v933_v19  ;;  %1397 = vpow2.f32 %v1223_v42  ;;  %v772_v18 = vor.u32 1.1754944e-38, %v771_v31 }
 0x12e   : > { %v1027_v47 = vmul.f32 %v1011_v50, %v938_v38  ;;  %v679_v3 = vadd.f32 %v1767_v15, %v640_v53  ;;  %1399 = vtanh.f32 %v648_v45  ;;  %v769_v15 = vand.u32 2147483647, %v1970_v37  ;;  %v574_v17 = vpop.f32.mrf.mxu2 }
 0x12f   : > { %v943_v7 = vmul.f32 %v1390_v1, %v942_v22  ;;  %1401 = vtanh.f32 %v674_v55  ;;  %v964_v10 = vand.u32 2147483647, %v1979_v36  ;;  %vm960_vm6 = vweird.f32 %v1979_v36 }
 0x130   : > { %v1394_v16 = vpop.eup %1393  ;;  %v1043_v13 = vadd.f32 %v1027_v47, %v1729_v60  ;;  %v1224_v11 = vmul.f32 -1.442695, %v679_v3  ;;  %v1012_v60 = vsub.f32 %v1392_v4, %v1737_v62  ;;  %vm770_vm5 = vcmp.eq.f32.partialorder %v769_v15, 8.507059e+37 }
 0x131   : > { %v761_v6 = vmul.f32 %v1394_v16, %v1970_v37  ;;  %v944_v8 = vadd.f32 %v1390_v1, %v943_v7  ;;  %vm766_vm1 = vweird.f32 %v1394_v16  ;;  %v967_v46 = vor.u32 1.1754944e-38, %v966_v32 }
 0x132   : > { %1059 = vst [vmem:[%s1812_s16 + $0x58] sm:$0xff] %v1043_v13  ;;  %v1396_v57 = vpop.eup %1395  ;;  %1403 = vpow2.f32 %v1224_v11  ;;  %vm767_vm3 = vmor %vm765_vm2, %vm766_vm1  ;;  %v575_v58 = vadd.f32 %v574_v17, %v1939_v40  ;;  %vm965_vm8 = vcmp.eq.f32.partialorder %v964_v10, 8.507059e+37 }
 0x133   : > { %v762_v52 = vsub.f32 1.0, %v761_v6  ;;  %v948_v26 = vsel %vm947_vm15, %v1390_v1, %v944_v8  ;;  %v1398_v14 = vpop.eup %1397  ;;  %v956_v48 = vmul.f32 %v1396_v57, %v1979_v36  ;;  %vm961_vm4 = vweird.f32 %v1396_v57 }
 0x134   : > { %v953_v9 = vsel %vm950_vm0, %v952_v61, %v948_v26  ;;  %v758_v24 = vadd.f32 1.0, %v1398_v14  ;;  %v1400_v12 = vpop.eup %1399  ;;  %vm962_vm7 = vmor %vm960_vm6, %vm961_vm4  ;;  %v678_v54 = vadd.f32 %v1775_v28, %v575_v58 }
 0x135   : > { %v763_v56 = vmul.f32 %v1394_v16, %v762_v52  ;;  %v1028_v20 = vmul.f32 %v1012_v60, %v953_v9  ;;  %v957_v5 = vsub.f32 1.0, %v956_v48  ;;  %v1402_v33 = vpop.eup %1401  ;;  %v1000_v25 = vsub.f32 %v1400_v12, %v1751_v2 }
 0x136   : > { %1405 = vrcp.f32 %v758_v24  ;;  %v1013_v39 = vsub.f32 %v1402_v33, %v1745_v0  ;;  %v981_v40 = vand.u32 2147483648, %v758_v24  ;;  %v979_v38 = vand.u32 2147483647, %v758_v24 }
 0x137   : > { %v764_v29 = vadd.f32 %v1394_v16, %v763_v56  ;;  %v1044_v21 = vadd.f32 %v1028_v20, %v1737_v62  ;;  %v958_v34 = vmul.f32 %v1396_v57, %v957_v5  ;;  %1407 = vtanh.f32 %v676_v27 }
 0x138   : > { %v1404_v30 = vpop.eup %1403  ;;  %vm975_vm10 = vweird.f32 %v758_v24  ;;  %v982_v47 = vor.u32 1.1754944e-38, %v981_v40  ;;  %vm980_vm12 = vcmp.eq.f32.partialorder %v979_v38, 8.507059e+37 }
 0x139   : > { %v768_v23 = vsel %vm767_vm3, %v1394_v16, %v764_v29  ;;  %1060 = vst [vmem:[%s1812_s16 + $0x60] sm:$0xff] %v1044_v21  ;;  %v959_v37 = vadd.f32 %v1396_v57, %v958_v34  ;;  %v759_v41 = vadd.f32 1.0, %v1404_v30 }
 0x13a   : > { %v773_v35 = vsel %vm770_vm5, %v772_v18, %v768_v23 }
 0x13b   : > { %v1016_v62 = vmul.f32 %v1000_v25, %v773_v35  ;;  %v963_v1 = vsel %vm962_vm7, %v1396_v57, %v959_v37  ;;  %1409 = vrcp.f32 %v759_v41  ;;  %v996_v4 = vand.u32 2147483648, %v759_v41  ;;  %v1414_v57 = vld [vmem:[%s1644_s11 + $0x78] sm:$0xff]  ;;  %s1465_s11 = scalar_lea.hbm %s2054_s5, 256 }
 0x13c   : > { %v1406_v45 = vpop.eup %1405  ;;  %v968_v49 = vsel %vm965_vm8, %v967_v46, %v963_v1  ;;  %1411 = vtanh.f32 %v678_v54  ;;  %v994_v13 = vand.u32 2147483647, %v759_v41  ;;  %vm990_vm14 = vweird.f32 %v759_v41  ;;  %p1467_p4 = scmp.lt.s32.totalorder %s1465_s11, %s1461_s8 }
 0x13d   : > { %v1032_v43 = vadd.f32 %v1016_v62, %v1751_v2  ;;  %v971_v50 = vmul.f32 %v1406_v45, %v758_v24  ;;  %v1029_v36 = vmul.f32 %v1013_v39, %v968_v49  ;;  %v1408_v53 = vpop.eup %1407  ;;  %vm976_vm9 = vweird.f32 %v1406_v45 }
 0x13e   : > { %vm977_vm11 = vmor %vm975_vm10, %vm976_vm9  ;;  %v997_v11 = vor.u32 1.1754944e-38, %v996_v4  ;;  %vm995_vm0 = vcmp.eq.f32.partialorder %v994_v13, 8.507059e+37  ;;  %p1468_p7 = por %p1467_p4, %p1466_p3 }
 0x13f   : > { %1048 = vst [vmem:[%s1812_s16] sm:$0xff] %v1032_v43  ;;  %v972_v19 = vsub.f32 1.0, %v971_v50  ;;  %v1045_v42 = vadd.f32 %v1029_v36, %v1745_v0  ;;  %v1014_v0 = vsub.f32 %v1408_v53, %v1413_v63 }
 0x140   : > { %p1469_p8 = pnand %p1468_p7, %p1464_p2 }
 0x141   : > { %v973_v22 = vmul.f32 %v1406_v45, %v972_v19  ;;  %1061 = vst [vmem:[%s1812_s16 + $0x68] sm:$0xff] %v1045_v42  ;;  %v1410_v55 = vpop.eup %1409 }
 0x142   : > { %v986_v2 = vmul.f32 %v1410_v55, %v759_v41  ;;  %vm991_vm13 = vweird.f32 %v1410_v55  ;;  %v1412_v6 = vpop.eup %1411 }
 0x143   : > { %v974_v59 = vadd.f32 %v1406_v45, %v973_v22  ;;  %vm992_vm15 = vmor %vm990_vm14, %vm991_vm13  ;;  %v1015_v52 = vsub.f32 %v1412_v6, %v1414_v57 }
 0x144   : > { %v987_v51 = vsub.f32 1.0, %v986_v2 }
 0x145   : > { %v978_v28 = vsel %vm977_vm11, %v1406_v45, %v974_v59 }
 0x146   : > { %v983_v7 = vsel %vm980_vm12, %v982_v47, %v978_v28  ;;  %v988_v3 = vmul.f32 %v1410_v55, %v987_v51 }
 0x147   : > { %v1030_v16 = vmul.f32 %v1014_v0, %v983_v7 }
 0x148   : > { %v989_v61 = vadd.f32 %v1410_v55, %v988_v3 }
 0x149   : > { %v1046_v8 = vadd.f32 %v1413_v63, %v1030_v16 }
 0x14a   : > { %v993_v44 = vsel %vm992_vm15, %v1410_v55, %v989_v61 }
 0x14b   : > { %1062 = vst [vmem:[%s1812_s16 + $0x70] sm:$0xff] %v1046_v8  ;;  %v998_v15 = vsel %vm995_vm0, %v997_v11, %v993_v44 }
 0x14c   : > { %v1031_v26 = vmul.f32 %v1015_v52, %v998_v15 }
 0x14e   : > { %v1047_v60 = vadd.f32 %v1414_v57, %v1031_v26 }
 0x150   : > { %1063 = vst [vmem:[%s1812_s16 + $0x78] sm:$0xff] %v1047_v60 }
 0x151   : > { %1472 = shalt.err (!%p1469_p8)
}
 0x152   : > { %s1516_s14 = smov 128   ;;  %s1517_s15 = smov 8  }
 0x153   : > { %1267 = dma.vmem_to_hbm [thread:$0]  (%p1586_p5), %s1078_s22, 2048, %s1080_s30, %s1065_s6, %s1516_s14, %s1516_s14, %s1517_s15  }
 0x154 PF: > { %p1279_p9 = scmp.ge.s32.totalorder %s1511_s21, 2  ;;  %s1094_s16 = sand.u32 1, %s1499_s18  }
 0x155   : > { %s1095_s17 = scalar_lea.sflag [#allocation4], %s1094_s16 }
 0x156   : > { %p1274_p10 = pnand %p1279_p9, %p1590_p6 }
 0x158   : > { %p1275_p11 = pneg %p1274_p10 }
 0x15a   : > { %1494 = dma.done.wait (%p1275_p11), %s1095_s17, 2048  }
 0x15b   : > { %1496 = vsyncadd (%p1275_p11), %s1095_s17, 4294965248  ;;  %p16_p12 = scmp.ge.s32.totalorder %s1573_s24, 4   ;;  %s2057_s18 = smov %s1503_s19 }
 0x15c   : > { %s2058_s19 = smov %s1507_s20  ;;  %s2059_s20 = smov %s1584_s27 }
 0x15d   : > { %s2060_s21 = smov %s1573_s24  ;;  %18 = sbr.rel (!%p16_p12) target bundleno = 4 (0x4), region = 83 }
 0x162   :  { %1101 = vsyncpa [#allocation3], 1 }
 0x163   :  { %1103 = vsyncpa [#allocation3 + $0x1], 1 }
 0x164   :  { %1104 = vsyncpa [#allocation4], 1 }
 0x165   :  { %1106 = vsyncpa [#allocation4 + $0x1], 1 }

</bundles_post_ra>
